<compile_context>
chip_gen: v7x
topology: tpu7x:2x2x1
jax: 0.10.0
libtpu: 0.0.40
codegen_flags: <defaults>
</compile_context>

<pallas_src>
import functools

import jax
import jax.numpy as jnp
from jax import lax
from jax.experimental import pallas as pl
from jax.experimental.pallas import tpu as pltpu

EPS = 1e-5


def _fold_bn(gamma, beta, mean, var):
    s = gamma / jnp.sqrt(var + EPS)
    return s, beta - mean * s


@functools.lru_cache(maxsize=None)
def _vmem_limit_bytes():
    cap = 64 * 1024 * 1024                    # conservative default (v7x VMEM)
    try:
        cap = int(pltpu.get_tpu_info().vmem_capacity_bytes)
    except Exception:
        pass
    return max(32 << 20, min(int(cap * 0.8), 100 << 20))


def _lanes(c):
    return ((c + 127) // 128) * 128


def _pick_row_tile(*, Ho, Wo, H, W, Cin, CP, s, N, has_ds, vmem_limit):
    """Largest output-row tile (divisor of Ho) whose full per-step VMEM
    footprint fits the generation-aware budget.  Prefers >= 2 row tiles when
    N == 1 so both v7x TensorCores have work."""
    conv1_per_tap = Cin >= 128
    if s == 1:
        in_bytes = H * W * _lanes(Cin) * 4
    else:
        ah = 2 // s
        Hp, Wp = Ho + ah + 2, Wo + ah
        in_bytes = s * s * Hp * Wp * _lanes(Cin) * 2
    w_bytes = (9 * Cin * CP + 9 * CP * CP + (Cin * CP if has_ds else 0)) * 2
    fixed = 2 * in_bytes + 2 * w_bytes + 8 * CP * 4

    def est(tr):
        trh = tr + 2
        b = fixed
        b += 2 * tr * Wo * CP * 4                        # output block x2
        b += trh * (Wo + 2) * CP * 2                     # y1 slab scratch
        if s == 1:
            b += (tr + 4) * (W + 2) * _lanes(Cin) * 2    # x slab scratch
        tmp = trh * Wo * CP * 4                          # y1 (f32)
        if not conv1_per_tap:
            tmp += trh * Wo * _lanes(9 * Cin) * 2        # fused im2col cols1
        tmp += 4 * tr * Wo * CP * 4                      # conv2 acc/taps/resid
        return b + int(1.5 * tmp)

    budget = vmem_limit - (2 << 20)
    divs = [d for d in range(1, Ho + 1) if Ho % d == 0]
    valid = [d for d in divs if (d * Wo) % 8 == 0 or d == Ho] or [Ho]
    fitting = [d for d in valid if est(d) <= budget] or [min(valid)]
    if N == 1:
        multi = [d for d in fitting if Ho // d >= 2]
        if multi:
            return max(multi)
    return max(fitting)


def _basic_block_kernel(x_ref, w1_ref, b1_ref, w2_ref, b2_ref, *rest,
                        s, H, W, Ho, Wo, Hp, TR, Cin, CP, has_ds,
                        conv1_per_tap):
    if has_ds:
        wds_ref, bds_ref, o_ref = rest[0], rest[1], rest[2]
        scratch = rest[3:]
    else:
        o_ref = rest[0]
        scratch = rest[1:]
    if s == 1:
        xslab_ref, y1slab_ref = scratch
    else:
        (y1slab_ref,) = scratch

    TRH = TR + 2                 # conv1 recomputes one halo output row per side
    M1 = TRH * Wo
    M2 = TR * Wo
    r0 = pl.program_id(1) * TR   # first output row of this tile

    # ---------------- conv1 input staging ------------------------------------
    if s == 1:
        # xslab row i <-> x row (r0 - 2 + i); col c <-> x col (c - 1).
        # Border columns / out-of-image halo rows hold the conv zero padding.
        zc = jnp.zeros((TR + 4, 1, Cin), jnp.bfloat16)
        xslab_ref[pl.ds(0, TR + 4), pl.ds(0, 1), :] = zc
        xslab_ref[pl.ds(0, TR + 4), pl.ds(W + 1, 1), :] = zc
        xslab_ref[pl.ds(2, TR), pl.ds(1, W), :] = (
            x_ref[0, pl.ds(r0, TR), :, :].astype(jnp.bfloat16))

        def _halo(row, ok):
            v = x_ref[0, pl.ds(row, 1), :, :]
            return jnp.where(ok, v, 0.0).astype(jnp.bfloat16)

        xslab_ref[pl.ds(0, 1), pl.ds(1, W), :] = _halo(
            jnp.maximum(r0 - 2, 0), r0 >= 2)
        xslab_ref[pl.ds(1, 1), pl.ds(1, W), :] = _halo(
            jnp.maximum(r0 - 1, 0), r0 >= 1)
        xslab_ref[pl.ds(TR + 2, 1), pl.ds(1, W), :] = _halo(
            jnp.minimum(r0 + TR, H - 1), r0 + TR < H)
        xslab_ref[pl.ds(TR + 3, 1), pl.ds(1, W), :] = _halo(
            jnp.minimum(r0 + TR + 1, H - 1), r0 + TR + 1 < H)

        def conv1_tap(kh, kw):
            return xslab_ref[pl.ds(kh, TRH), pl.ds(kw, Wo), :]
    else:
        # phase-decomposed, pre-padded bf16 input: every tap is a
        # static-offset window of one phase (no strided loads).
        def conv1_tap(kh, kw):
            ah, ph = divmod(kh, s)
            aw, pw = divmod(kw, s)
            base = (ph * s + pw) * Hp
            return x_ref[0, pl.ds(base + r0 + ah, TRH), pl.ds(aw, Wo), :]

    # ---------------- conv1 (3x3, stride s) + folded BN1 + ReLU ---------------
    if conv1_per_tap:
        y1 = jnp.zeros((M1, CP), jnp.float32)
        for kh in range(3):
            for kw in range(3):
                tap = conv1_tap(kh, kw).reshape(M1, Cin)
                wk = w1_ref[pl.ds((kh * 3 + kw) * Cin, Cin), :]
                y1 = y1 + jnp.dot(tap, wk, preferred_element_type=jnp.float32)
    else:
        cols1 = jnp.concatenate(
            [conv1_tap(kh, kw) for kh in range(3) for kw in range(3)],
            axis=-1).reshape(M1, 9 * Cin)
        y1 = jnp.dot(cols1, w1_ref[...], preferred_element_type=jnp.float32)

    y1 = jnp.maximum(y1 + b1_ref[...], 0.0).reshape(TRH, Wo, CP)
    # y1 rows outside [0, Ho) are conv2's vertical zero padding.
    j = lax.broadcasted_iota(jnp.int32, (TRH, 1, 1), 0)
    rowok = jnp.logical_and(r0 - 1 + j >= 0, r0 - 1 + j < Ho)
    y1 = jnp.where(rowok, y1, 0.0).astype(jnp.bfloat16)

    # ---------------- conv2 staging: y1 slab with zero border columns ---------
    zc2 = jnp.zeros((TRH, 1, CP), jnp.bfloat16)
    y1slab_ref[pl.ds(0, TRH), pl.ds(0, 1), :] = zc2
    y1slab_ref[pl.ds(0, TRH), pl.ds(Wo + 1, 1), :] = zc2
    y1slab_ref[pl.ds(0, TRH), pl.ds(1, Wo), :] = y1

    # ---------------- residual ------------------------------------------------
    if s == 1:
        xres = x_ref[0, pl.ds(r0, TR), :, :].reshape(M2, Cin)        # f32
    else:
        a1, p1 = divmod(1, s)
        base_r = (p1 * s + p1) * Hp
        xres = x_ref[0, pl.ds(base_r + r0 + a1 + 1, TR),
                     pl.ds(a1, Wo), :].reshape(M2, Cin)              # bf16
    if has_ds:
        res = jnp.dot(xres.astype(jnp.bfloat16), wds_ref[...],
                      preferred_element_type=jnp.float32) + bds_ref[...]
    else:
        res = xres.astype(jnp.float32)
        if CP != Cin:
            res = jnp.concatenate(
                [res, jnp.zeros((M2, CP - Cin), jnp.float32)], axis=-1)

    # ---------------- conv2 (3x3, stride 1) + folded BN2 + residual -----------
    # Per-tap accumulating matmuls: no (M, 9*CP) im2col materialization.
    out = res + b2_ref[...]
    for dh in range(3):
        for dw in range(3):
            tap = y1slab_ref[pl.ds(dh, TR), pl.ds(dw, Wo), :].reshape(M2, CP)
            wk = w2_ref[pl.ds((dh * 3 + dw) * CP, CP), :]
            out = out + jnp.dot(tap, wk, preferred_element_type=jnp.float32)

    o_ref[0] = out.astype(o_ref.dtype)


@functools.partial(jax.jit, static_argnums=(2,))
def basic_block_pallas(x_nchw, P, stride):
    """Forward pass of the PyTorch BasicBlock (eval-mode BatchNorm), NCHW API."""
    x = jnp.transpose(x_nchw, (0, 2, 3, 1)).astype(jnp.float32)       # NHWC
    N, H, W, Cin = x.shape
    Cout = P['w1'].shape[-1]
    s = int(stride)
    Ho = (H - 1) // s + 1
    Wo = (W - 1) // s + 1
    has_ds = (s != 1) or (Cin != Cout)

    # Lane-dense output channels: pad Cout up to a full 128-lane vreg width.
    if Cout % 128 == 0:
        CP = Cout
    elif Cout < 128:
        CP = 128
    else:
        CP = ((Cout + 7) // 8) * 8

    # Fold BN scales into the conv weights (wrapper side, zero runtime cost).
    s1, b1 = _fold_bn(P['g1'], P['b1'], P['m1'], P['v1'])
    s2, b2 = _fold_bn(P['g2'], P['b2'], P['m2'], P['v2'])
    w1f = P['w1'].reshape(9 * Cin, Cout) * s1[None, :]
    w1f = jnp.pad(w1f, ((0, 0), (0, CP - Cout))).astype(jnp.bfloat16)
    b1f = jnp.pad(b1, (0, CP - Cout)).reshape(1, CP).astype(jnp.float32)
    w2f = P['w2'] * s2                                                 # (3,3,Cout,Cout)
    w2f = jnp.pad(w2f, ((0, 0), (0, 0), (0, CP - Cout), (0, CP - Cout)))
    w2f = w2f.reshape(9 * CP, CP).astype(jnp.bfloat16)
    b2f = jnp.pad(b2, (0, CP - Cout)).reshape(1, CP).astype(jnp.float32)

    # Kernel input: raw f32 NHWC for stride 1 (no HBM re-materialization and a
    # full-precision identity residual); compact bf16 phase decomposition for
    # stride >= 2 (downsample path always exists there).
    if s == 1:
        kin = x
        Hp = 0
        in_block = (1, H, W, Cin)
    else:
        ah_max = 2 // s
        Hp = Ho + ah_max + 2
        Wp = Wo + ah_max
        xp = jnp.pad(x, ((0, 0), (1, 1), (1, 1), (0, 0)))
        phase_list = []
        for ph in range(s):
            for pw in range(s):
                g = xp[:, ph::s, pw::s, :]
                g = jnp.pad(g, ((0, 0), (1, 0), (0, 0), (0, 0)))
                padh = max(0, Hp - g.shape[1])
                padw = max(0, Wp - g.shape[2])
                g = jnp.pad(g, ((0, 0), (0, padh), (0, padw), (0, 0)))
                phase_list.append(g[:, :Hp, :Wp, :])
        kin = jnp.concatenate(phase_list, axis=1).astype(jnp.bfloat16)
        in_block = (1, s * s * Hp, Wp, Cin)

    vmem_limit = _vmem_limit_bytes()
    TR = _pick_row_tile(Ho=Ho, Wo=Wo, H=H, W=W, Cin=Cin, CP=CP, s=s, N=N,
                        has_ds=has_ds, vmem_limit=vmem_limit)
    T = Ho // TR
    conv1_per_tap = Cin >= 128

    kernel = functools.partial(
        _basic_block_kernel, s=s, H=H, W=W, Ho=Ho, Wo=Wo, Hp=Hp, TR=TR,
        Cin=Cin, CP=CP, has_ds=has_ds, conv1_per_tap=conv1_per_tap)

    vec_spec = pl.BlockSpec((1, CP), lambda n, t: (0, 0))
    in_specs = [
        pl.BlockSpec(in_block, lambda n, t: (n, 0, 0, 0)),
        pl.BlockSpec((9 * Cin, CP), lambda n, t: (0, 0)),   # w1 (BN folded)
        vec_spec,                                           # b1
        pl.BlockSpec((9 * CP, CP), lambda n, t: (0, 0)),    # w2 (BN folded)
        vec_spec,                                           # b2
    ]
    args = [kin, w1f, b1f, w2f, b2f]
    if has_ds:
        sds, bds_bn = _fold_bn(P['gds'], P['bds_bn'], P['mds'], P['vds'])
        wdsf = P['wds'].reshape(Cin, Cout) * sds[None, :]
        wdsf = jnp.pad(wdsf, ((0, 0), (0, CP - Cout))).astype(jnp.bfloat16)
        bdsf = jnp.pad(bds_bn + P['bds'] * sds,
                       (0, CP - Cout)).reshape(1, CP).astype(jnp.float32)
        in_specs += [pl.BlockSpec((Cin, CP), lambda n, t: (0, 0)), vec_spec]
        args += [wdsf, bdsf]

    scratch = [pltpu.VMEM((TR + 2, Wo + 2, CP), jnp.bfloat16)]      # y1 slab
    if s == 1:
        scratch = [pltpu.VMEM((TR + 4, W + 2, Cin), jnp.bfloat16)] + scratch

    out_flat = pl.pallas_call(
        kernel,
        out_shape=jax.ShapeDtypeStruct((N, Ho * Wo, CP), jnp.float32),
        grid_spec=pltpu.PrefetchScalarGridSpec(
            num_scalar_prefetch=0,
            grid=(N, T),
            in_specs=in_specs,
            out_specs=pl.BlockSpec((1, TR * Wo, CP), lambda n, t: (n, t, 0)),
            scratch_shapes=scratch,
        ),
        compiler_params=pltpu.CompilerParams(
            dimension_semantics=("parallel", "parallel"),
            vmem_limit_bytes=vmem_limit),
    )(*args)

    out = out_flat[:, :, :Cout].reshape(N, Ho, Wo, Cout)
    # TODO(synk): keep NHWC (and/or bf16) output when the surrounding graph
    # tolerates it to save the relayout pass; NCHW f32 matches the module API.
    return jnp.transpose(out, (0, 3, 1, 2))


# ------------------------------ pure-JAX reference ---------------------------
def ref_basic_block(x_nchw, P, stride):
    x = jnp.transpose(x_nchw, (0, 2, 3, 1)).astype(jnp.float32)
    dn = ('NHWC', 'HWIO', 'NHWC')

    def bn(y, g, b, m, v):
        return (y - m) / jnp.sqrt(v + EPS) * g + b

    y = lax.conv_general_dilated(x, P['w1'], (stride, stride),
                                 ((1, 1), (1, 1)), dimension_numbers=dn)
    y = jax.nn.relu(bn(y, P['g1'], P['b1'], P['m1'], P['v1']))
    y = lax.conv_general_dilated(y, P['w2'], (1, 1),
                                 ((1, 1), (1, 1)), dimension_numbers=dn)
    y = bn(y, P['g2'], P['b2'], P['m2'], P['v2'])

    Cin, Cout = x.shape[-1], P['w1'].shape[-1]
    if stride != 1 or Cin != Cout:
        r = lax.conv_general_dilated(x, P['wds'], (stride, stride),
                                     ((0, 0), (0, 0)),
                                     dimension_numbers=dn) + P['bds']
        r = bn(r, P['gds'], P['bds_bn'], P['mds'], P['vds'])
    else:
        r = x
    return jnp.transpose(y + r, (0, 3, 1, 2))


def init_params(key, Cin, Cout):
    ks = jax.random.split(key, 16)
    n = lambda k, s: 0.1 * jax.random.normal(k, s, jnp.float32)
    u = lambda k, s: jax.random.uniform(k, s, jnp.float32, 0.5, 1.5)
    return dict(
        w1=n(ks[0], (3, 3, Cin, Cout)),
        g1=u(ks[1], (Cout,)), b1=n(ks[2], (Cout,)),
        m1=n(ks[3], (Cout,)), v1=u(ks[4], (Cout,)),
        w2=n(ks[5], (3, 3, Cout, Cout)),
        g2=u(ks[6], (Cout,)), b2=n(ks[7], (Cout,)),
        m2=n(ks[8], (Cout,)), v2=u(ks[9], (Cout,)),
        wds=n(ks[10], (1, 1, Cin, Cout)), bds=n(ks[11], (Cout,)),
        gds=u(ks[12], (Cout,)), bds_bn=n(ks[13], (Cout,)),
        mds=n(ks[14], (Cout,)), vds=u(ks[15], (Cout,)),
    )


if __name__ == "__main__":
    key = jax.random.PRNGKey(0)
    # (Cin, Cout, stride, x_shape): stride-2 downsample, identity residual,
    # and stride-1 channel-change (1x1 downsample) paths.
    configs = [(4, 8, 2, (2, 4, 16, 16)),
               (8, 8, 1, (2, 8, 16, 16)),
               (4, 8, 1, (2, 4, 16, 16))]
    ok = True
    for Cin, Cout, stride, xshape in configs:
        key, kx, kp = jax.random.split(key, 3)
        x = jax.random.normal(kx, xshape, jnp.float32)
        P = init_params(kp, Cin, Cout)
        out = jax.block_until_ready(basic_block_pallas(x, P, stride))
        ref = ref_basic_block(x, P, stride)
        # bf16 matmul inputs -> bf16-level tolerance vs the f32 reference
        ok = ok and bool(jnp.allclose(out, ref, atol=5e-2, rtol=5e-2))
    assert ok, "Pallas BasicBlock does not match reference"
    print("KERNEL_OK")
</pallas_src>

<mosaic_0001>
module attributes {stable_mosaic.version = 11 : i64} {
  func.func @_basic_block_kernel(%arg0: i32, %arg1: i32, %arg2: memref<1x44x9x4xbf16, #tpu.memory_space<vmem>>, %arg3: memref<36x128xbf16, #tpu.memory_space<vmem>>, %arg4: memref<1x128xf32, #tpu.memory_space<vmem>>, %arg5: memref<1152x128xbf16, #tpu.memory_space<vmem>>, %arg6: memref<1x128xf32, #tpu.memory_space<vmem>>, %arg7: memref<4x128xbf16, #tpu.memory_space<vmem>>, %arg8: memref<1x128xf32, #tpu.memory_space<vmem>>, %arg9: memref<1x64x128xf32, #tpu.memory_space<vmem>>, %arg10: memref<10x10x128xbf16, #tpu.memory_space<vmem>>) attributes {dimension_semantics = [#tpu.dimension_semantics<parallel>, #tpu.dimension_semantics<parallel>], iteration_bounds = array<i64: 2, 1>, scalar_prefetch = 0 : i64, scratch_operands = 1 : i64, tpu.core_type = #tpu.core_type<tc>, window_params = [{transform_indices = @transform_0, window_bounds = array<i64: 1, 44, 9, 4>}, {pipeline_mode = #tpu.pipeline_mode<synchronous>, transform_indices = @transform_1, window_bounds = array<i64: 36, 128>}, {pipeline_mode = #tpu.pipeline_mode<synchronous>, transform_indices = @transform_2, window_bounds = array<i64: 1, 128>}, {pipeline_mode = #tpu.pipeline_mode<synchronous>, transform_indices = @transform_3, window_bounds = array<i64: 1152, 128>}, {pipeline_mode = #tpu.pipeline_mode<synchronous>, transform_indices = @transform_4, window_bounds = array<i64: 1, 128>}, {pipeline_mode = #tpu.pipeline_mode<synchronous>, transform_indices = @transform_5, window_bounds = array<i64: 4, 128>}, {pipeline_mode = #tpu.pipeline_mode<synchronous>, transform_indices = @transform_6, window_bounds = array<i64: 1, 128>}, {transform_indices = @transform_7, window_bounds = array<i64: 1, 64, 128>}]} {
    %c8_i32 = arith.constant 8 : i32
    %0 = arith.muli %arg1, %c8_i32 : i32
    %c0_i32 = arith.constant 0 : i32
    %1 = arith.addi %c0_i32, %0 : i32
    %c0_i32_0 = arith.constant 0 : i32
    %2 = arith.addi %1, %c0_i32_0 : i32
    %c0 = arith.constant 0 : index
    %3 = arith.index_cast %2 : i32 to index
    %c0_1 = arith.constant 0 : index
    %c0_2 = arith.constant 0 : index
    %4 = vector.load %arg2[%c0, %3, %c0_1, %c0_2] : memref<1x44x9x4xbf16, #tpu.memory_space<vmem>>, vector<1x10x8x4xbf16>
    %5 = vector.shape_cast %4 : vector<1x10x8x4xbf16> to vector<10x8x4xbf16>
    %c11_i32 = arith.constant 11 : i32
    %6 = arith.addi %c11_i32, %0 : i32
    %c0_i32_3 = arith.constant 0 : i32
    %7 = arith.addi %6, %c0_i32_3 : i32
    %c0_4 = arith.constant 0 : index
    %8 = arith.index_cast %7 : i32 to index
    %c0_5 = arith.constant 0 : index
    %c0_6 = arith.constant 0 : index
    %9 = vector.load %arg2[%c0_4, %8, %c0_5, %c0_6] : memref<1x44x9x4xbf16, #tpu.memory_space<vmem>>, vector<1x10x8x4xbf16>
    %10 = vector.shape_cast %9 : vector<1x10x8x4xbf16> to vector<10x8x4xbf16>
    %c0_i32_7 = arith.constant 0 : i32
    %11 = arith.addi %c0_i32_7, %0 : i32
    %c0_i32_8 = arith.constant 0 : i32
    %12 = arith.addi %11, %c0_i32_8 : i32
    %c0_9 = arith.constant 0 : index
    %13 = arith.index_cast %12 : i32 to index
    %c1 = arith.constant 1 : index
    %c0_10 = arith.constant 0 : index
    %14 = vector.load %arg2[%c0_9, %13, %c1, %c0_10] : memref<1x44x9x4xbf16, #tpu.memory_space<vmem>>, vector<1x10x8x4xbf16>
    %15 = vector.shape_cast %14 : vector<1x10x8x4xbf16> to vector<10x8x4xbf16>
    %c22_i32 = arith.constant 22 : i32
    %16 = arith.addi %c22_i32, %0 : i32
    %c0_i32_11 = arith.constant 0 : i32
    %17 = arith.addi %16, %c0_i32_11 : i32
    %c0_12 = arith.constant 0 : index
    %18 = arith.index_cast %17 : i32 to index
    %c0_13 = arith.constant 0 : index
    %c0_14 = arith.constant 0 : index
    %19 = vector.load %arg2[%c0_12, %18, %c0_13, %c0_14] : memref<1x44x9x4xbf16, #tpu.memory_space<vmem>>, vector<1x10x8x4xbf16>
    %20 = vector.shape_cast %19 : vector<1x10x8x4xbf16> to vector<10x8x4xbf16>
    %c33_i32 = arith.constant 33 : i32
    %21 = arith.addi %c33_i32, %0 : i32
    %c0_i32_15 = arith.constant 0 : i32
    %22 = arith.addi %21, %c0_i32_15 : i32
    %c0_16 = arith.constant 0 : index
    %23 = arith.index_cast %22 : i32 to index
    %c0_17 = arith.constant 0 : index
    %c0_18 = arith.constant 0 : index
    %24 = vector.load %arg2[%c0_16, %23, %c0_17, %c0_18] : memref<1x44x9x4xbf16, #tpu.memory_space<vmem>>, vector<1x10x8x4xbf16>
    %25 = vector.shape_cast %24 : vector<1x10x8x4xbf16> to vector<10x8x4xbf16>
    %c22_i32_19 = arith.constant 22 : i32
    %26 = arith.addi %c22_i32_19, %0 : i32
    %c0_i32_20 = arith.constant 0 : i32
    %27 = arith.addi %26, %c0_i32_20 : i32
    %c0_21 = arith.constant 0 : index
    %28 = arith.index_cast %27 : i32 to index
    %c1_22 = arith.constant 1 : index
    %c0_23 = arith.constant 0 : index
    %29 = vector.load %arg2[%c0_21, %28, %c1_22, %c0_23] : memref<1x44x9x4xbf16, #tpu.memory_space<vmem>>, vector<1x10x8x4xbf16>
    %30 = vector.shape_cast %29 : vector<1x10x8x4xbf16> to vector<10x8x4xbf16>
    %c0_i32_24 = arith.constant 0 : i32
    %31 = arith.addi %c0_i32_24, %0 : i32
    %c1_i32 = arith.constant 1 : i32
    %32 = arith.addi %31, %c1_i32 : i32
    %c0_25 = arith.constant 0 : index
    %33 = arith.index_cast %32 : i32 to index
    %c0_26 = arith.constant 0 : index
    %c0_27 = arith.constant 0 : index
    %34 = vector.load %arg2[%c0_25, %33, %c0_26, %c0_27] : memref<1x44x9x4xbf16, #tpu.memory_space<vmem>>, vector<1x10x8x4xbf16>
    %35 = vector.shape_cast %34 : vector<1x10x8x4xbf16> to vector<10x8x4xbf16>
    %c11_i32_28 = arith.constant 11 : i32
    %36 = arith.addi %c11_i32_28, %0 : i32
    %c1_i32_29 = arith.constant 1 : i32
    %37 = arith.addi %36, %c1_i32_29 : i32
    %c0_30 = arith.constant 0 : index
    %38 = arith.index_cast %37 : i32 to index
    %c0_31 = arith.constant 0 : index
    %c0_32 = arith.constant 0 : index
    %39 = vector.load %arg2[%c0_30, %38, %c0_31, %c0_32] : memref<1x44x9x4xbf16, #tpu.memory_space<vmem>>, vector<1x10x8x4xbf16>
    %40 = vector.shape_cast %39 : vector<1x10x8x4xbf16> to vector<10x8x4xbf16>
    %c0_i32_33 = arith.constant 0 : i32
    %41 = arith.addi %c0_i32_33, %0 : i32
    %c1_i32_34 = arith.constant 1 : i32
    %42 = arith.addi %41, %c1_i32_34 : i32
    %c0_35 = arith.constant 0 : index
    %43 = arith.index_cast %42 : i32 to index
    %c1_36 = arith.constant 1 : index
    %c0_37 = arith.constant 0 : index
    %44 = vector.load %arg2[%c0_35, %43, %c1_36, %c0_37] : memref<1x44x9x4xbf16, #tpu.memory_space<vmem>>, vector<1x10x8x4xbf16>
    %45 = vector.shape_cast %44 : vector<1x10x8x4xbf16> to vector<10x8x4xbf16>
    %46 = tpu.concatenate %5, %10, %15, %20, %25, %30, %35, %40, %45 in 2 : vector<10x8x4xbf16>, vector<10x8x4xbf16>, vector<10x8x4xbf16>, vector<10x8x4xbf16>, vector<10x8x4xbf16>, vector<10x8x4xbf16>, vector<10x8x4xbf16>, vector<10x8x4xbf16>, vector<10x8x4xbf16> -> vector<10x8x36xbf16>
    %47 = vector.shape_cast %46 : vector<10x8x36xbf16> to vector<80x36xbf16>
    %c0_38 = arith.constant 0 : index
    %c0_39 = arith.constant 0 : index
    %48 = vector.load %arg3[%c0_38, %c0_39] : memref<36x128xbf16, #tpu.memory_space<vmem>>, vector<36x128xbf16>
    %cst = arith.constant dense<0.000000e+00> : vector<80x128xf32>
    %49 = tpu.matmul %47, %48, %cst {dimension_numbers = #tpu.dot_dimension_numbers<[1], [0], [0], [1], [0, 0, 1, 1], [], []>} : vector<80x36xbf16>, vector<36x128xbf16>, vector<80x128xf32> -> vector<80x128xf32>
    %c0_40 = arith.constant 0 : index
    %c0_41 = arith.constant 0 : index
    %50 = vector.load %arg4[%c0_40, %c0_41] : memref<1x128xf32, #tpu.memory_space<vmem>>, vector<1x128xf32>
    %51 = vector.broadcast %50 : vector<1x128xf32> to vector<80x128xf32>
    %52 = arith.addf %49, %51 : vector<80x128xf32>
    %cst_42 = arith.constant 0.000000e+00 : f32
    %53 = vector.broadcast %cst_42 : f32 to vector<80x128xf32>
    %54 = arith.maximumf %52, %53 : vector<80x128xf32>
    %55 = vector.shape_cast %54 : vector<80x128xf32> to vector<10x8x128xf32>
    %56 = tpu.iota {dimensions = array<i32: 0>} : vector<10x1x1xi32>
    %c1_i32_43 = arith.constant 1 : i32
    %57 = arith.subi %0, %c1_i32_43 : i32
    %58 = vector.broadcast %57 : i32 to vector<10x1x1xi32>
    %59 = arith.addi %58, %56 : vector<10x1x1xi32>
    %c0_i32_44 = arith.constant 0 : i32
    %60 = vector.broadcast %c0_i32_44 : i32 to vector<10x1x1xi32>
    %61 = arith.cmpi sge, %59, %60 : vector<10x1x1xi32>
    %c1_i32_45 = arith.constant 1 : i32
    %62 = arith.subi %0, %c1_i32_45 : i32
    %63 = vector.broadcast %62 : i32 to vector<10x1x1xi32>
    %64 = arith.addi %63, %56 : vector<10x1x1xi32>
    %c8_i32_46 = arith.constant 8 : i32
    %65 = vector.broadcast %c8_i32_46 : i32 to vector<10x1x1xi32>
    %66 = arith.cmpi slt, %64, %65 : vector<10x1x1xi32>
    %67 = arith.andi %61, %66 : vector<10x1x1xi1>
    %cst_47 = arith.constant 0.000000e+00 : f32
    %68 = vector.shape_cast %67 : vector<10x1x1xi1> to vector<10x1x1xi1>
    %69 = vector.broadcast %68 : vector<10x1x1xi1> to vector<10x8x128xi1>
    %70 = vector.broadcast %cst_47 : f32 to vector<10x8x128xf32>
    %71 = arith.select %69, %55, %70 : vector<10x8x128xi1>, vector<10x8x128xf32>
    %72 = arith.truncf %71 : vector<10x8x128xf32> to vector<10x8x128xbf16>
    %cst_48 = arith.constant 0.000000e+00 : bf16
    %73 = vector.broadcast %cst_48 : bf16 to vector<10x1x128xbf16>
    %c0_49 = arith.constant 0 : index
    %c0_50 = arith.constant 0 : index
    %c0_51 = arith.constant 0 : index
    %74 = vector.load %arg10[%c0_49, %c0_50, %c0_51] : memref<10x10x128xbf16, #tpu.memory_space<vmem>>, vector<10x1x128xbf16>
    tpu.vector_store %arg10[%c0_49, %c0_50, %c0_51], %73 {strides = array<i32>} : memref<10x10x128xbf16, #tpu.memory_space<vmem>>, vector<10x1x128xbf16>,
    %c0_52 = arith.constant 0 : index
    %c9 = arith.constant 9 : index
    %c0_53 = arith.constant 0 : index
    %75 = vector.load %arg10[%c0_52, %c9, %c0_53] : memref<10x10x128xbf16, #tpu.memory_space<vmem>>, vector<10x1x128xbf16>
    tpu.vector_store %arg10[%c0_52, %c9, %c0_53], %73 {strides = array<i32>} : memref<10x10x128xbf16, #tpu.memory_space<vmem>>, vector<10x1x128xbf16>,
    %c0_54 = arith.constant 0 : index
    %c1_55 = arith.constant 1 : index
    %c0_56 = arith.constant 0 : index
    %76 = vector.load %arg10[%c0_54, %c1_55, %c0_56] : memref<10x10x128xbf16, #tpu.memory_space<vmem>>, vector<10x8x128xbf16>
    tpu.vector_store %arg10[%c0_54, %c1_55, %c0_56], %72 {strides = array<i32>} : memref<10x10x128xbf16, #tpu.memory_space<vmem>>, vector<10x8x128xbf16>,
    %c33_i32_57 = arith.constant 33 : i32
    %77 = arith.addi %c33_i32_57, %0 : i32
    %c0_i32_58 = arith.constant 0 : i32
    %78 = arith.addi %77, %c0_i32_58 : i32
    %c1_i32_59 = arith.constant 1 : i32
    %79 = arith.addi %78, %c1_i32_59 : i32
    %c0_60 = arith.constant 0 : index
    %80 = arith.index_cast %79 : i32 to index
    %c0_61 = arith.constant 0 : index
    %c0_62 = arith.constant 0 : index
    %81 = vector.load %arg2[%c0_60, %80, %c0_61, %c0_62] : memref<1x44x9x4xbf16, #tpu.memory_space<vmem>>, vector<1x8x8x4xbf16>
    %82 = vector.shape_cast %81 : vector<1x8x8x4xbf16> to vector<8x8x4xbf16>
    %83 = vector.shape_cast %82 : vector<8x8x4xbf16> to vector<64x4xbf16>
    %c0_63 = arith.constant 0 : index
    %c0_64 = arith.constant 0 : index
    %84 = vector.load %arg7[%c0_63, %c0_64] : memref<4x128xbf16, #tpu.memory_space<vmem>>, vector<4x128xbf16>
    %cst_65 = arith.constant dense<0.000000e+00> : vector<64x128xf32>
    %85 = tpu.matmul %83, %84, %cst_65 {dimension_numbers = #tpu.dot_dimension_numbers<[1], [0], [0], [1], [0, 0, 1, 1], [], []>} : vector<64x4xbf16>, vector<4x128xbf16>, vector<64x128xf32> -> vector<64x128xf32>
    %c0_66 = arith.constant 0 : index
    %c0_67 = arith.constant 0 : index
    %86 = vector.load %arg8[%c0_66, %c0_67] : memref<1x128xf32, #tpu.memory_space<vmem>>, vector<1x128xf32>
    %87 = vector.broadcast %86 : vector<1x128xf32> to vector<64x128xf32>
    %88 = arith.addf %85, %87 : vector<64x128xf32>
    %c0_68 = arith.constant 0 : index
    %c0_69 = arith.constant 0 : index
    %89 = vector.load %arg6[%c0_68, %c0_69] : memref<1x128xf32, #tpu.memory_space<vmem>>, vector<1x128xf32>
    %90 = vector.broadcast %89 : vector<1x128xf32> to vector<64x128xf32>
    %91 = arith.addf %88, %90 : vector<64x128xf32>
    %c0_70 = arith.constant 0 : index
    %c0_71 = arith.constant 0 : index
    %c0_72 = arith.constant 0 : index
    %92 = vector.load %arg10[%c0_70, %c0_71, %c0_72] : memref<10x10x128xbf16, #tpu.memory_space<vmem>>, vector<8x8x128xbf16>
    %93 = vector.shape_cast %92 : vector<8x8x128xbf16> to vector<64x128xbf16>
    %c0_73 = arith.constant 0 : index
    %c0_74 = arith.constant 0 : index
    %94 = vector.load %arg5[%c0_73, %c0_74] : memref<1152x128xbf16, #tpu.memory_space<vmem>>, vector<128x128xbf16>
    %cst_75 = arith.constant dense<0.000000e+00> : vector<64x128xf32>
    %95 = tpu.matmul %93, %94, %cst_75 {dimension_numbers = #tpu.dot_dimension_numbers<[1], [0], [0], [1], [0, 0, 1, 1], [], []>} : vector<64x128xbf16>, vector<128x128xbf16>, vector<64x128xf32> -> vector<64x128xf32>
    %96 = arith.addf %91, %95 : vector<64x128xf32>
    %c0_76 = arith.constant 0 : index
    %c1_77 = arith.constant 1 : index
    %c0_78 = arith.constant 0 : index
    %97 = vector.load %arg10[%c0_76, %c1_77, %c0_78] : memref<10x10x128xbf16, #tpu.memory_space<vmem>>, vector<8x8x128xbf16>
    %98 = vector.shape_cast %97 : vector<8x8x128xbf16> to vector<64x128xbf16>
    %c128 = arith.constant 128 : index
    %c0_79 = arith.constant 0 : index
    %99 = vector.load %arg5[%c128, %c0_79] : memref<1152x128xbf16, #tpu.memory_space<vmem>>, vector<128x128xbf16>
    %cst_80 = arith.constant dense<0.000000e+00> : vector<64x128xf32>
    %100 = tpu.matmul %98, %99, %cst_80 {dimension_numbers = #tpu.dot_dimension_numbers<[1], [0], [0], [1], [0, 0, 1, 1], [], []>} : vector<64x128xbf16>, vector<128x128xbf16>, vector<64x128xf32> -> vector<64x128xf32>
    %101 = arith.addf %96, %100 : vector<64x128xf32>
    %c0_81 = arith.constant 0 : index
    %c2 = arith.constant 2 : index
    %c0_82 = arith.constant 0 : index
    %102 = vector.load %arg10[%c0_81, %c2, %c0_82] : memref<10x10x128xbf16, #tpu.memory_space<vmem>>, vector<8x8x128xbf16>
    %103 = vector.shape_cast %102 : vector<8x8x128xbf16> to vector<64x128xbf16>
    %c256 = arith.constant 256 : index
    %c0_83 = arith.constant 0 : index
    %104 = vector.load %arg5[%c256, %c0_83] : memref<1152x128xbf16, #tpu.memory_space<vmem>>, vector<128x128xbf16>
    %cst_84 = arith.constant dense<0.000000e+00> : vector<64x128xf32>
    %105 = tpu.matmul %103, %104, %cst_84 {dimension_numbers = #tpu.dot_dimension_numbers<[1], [0], [0], [1], [0, 0, 1, 1], [], []>} : vector<64x128xbf16>, vector<128x128xbf16>, vector<64x128xf32> -> vector<64x128xf32>
    %106 = arith.addf %101, %105 : vector<64x128xf32>
    %c1_85 = arith.constant 1 : index
    %c0_86 = arith.constant 0 : index
    %c0_87 = arith.constant 0 : index
    %107 = vector.load %arg10[%c1_85, %c0_86, %c0_87] : memref<10x10x128xbf16, #tpu.memory_space<vmem>>, vector<8x8x128xbf16>
    %108 = vector.shape_cast %107 : vector<8x8x128xbf16> to vector<64x128xbf16>
    %c384 = arith.constant 384 : index
    %c0_88 = arith.constant 0 : index
    %109 = vector.load %arg5[%c384, %c0_88] : memref<1152x128xbf16, #tpu.memory_space<vmem>>, vector<128x128xbf16>
    %cst_89 = arith.constant dense<0.000000e+00> : vector<64x128xf32>
    %110 = tpu.matmul %108, %109, %cst_89 {dimension_numbers = #tpu.dot_dimension_numbers<[1], [0], [0], [1], [0, 0, 1, 1], [], []>} : vector<64x128xbf16>, vector<128x128xbf16>, vector<64x128xf32> -> vector<64x128xf32>
    %111 = arith.addf %106, %110 : vector<64x128xf32>
    %c1_90 = arith.constant 1 : index
    %c1_91 = arith.constant 1 : index
    %c0_92 = arith.constant 0 : index
    %112 = vector.load %arg10[%c1_90, %c1_91, %c0_92] : memref<10x10x128xbf16, #tpu.memory_space<vmem>>, vector<8x8x128xbf16>
    %113 = vector.shape_cast %112 : vector<8x8x128xbf16> to vector<64x128xbf16>
    %c512 = arith.constant 512 : index
    %c0_93 = arith.constant 0 : index
    %114 = vector.load %arg5[%c512, %c0_93] : memref<1152x128xbf16, #tpu.memory_space<vmem>>, vector<128x128xbf16>
    %cst_94 = arith.constant dense<0.000000e+00> : vector<64x128xf32>
    %115 = tpu.matmul %113, %114, %cst_94 {dimension_numbers = #tpu.dot_dimension_numbers<[1], [0], [0], [1], [0, 0, 1, 1], [], []>} : vector<64x128xbf16>, vector<128x128xbf16>, vector<64x128xf32> -> vector<64x128xf32>
    %116 = arith.addf %111, %115 : vector<64x128xf32>
    %c1_95 = arith.constant 1 : index
    %c2_96 = arith.constant 2 : index
    %c0_97 = arith.constant 0 : index
    %117 = vector.load %arg10[%c1_95, %c2_96, %c0_97] : memref<10x10x128xbf16, #tpu.memory_space<vmem>>, vector<8x8x128xbf16>
    %118 = vector.shape_cast %117 : vector<8x8x128xbf16> to vector<64x128xbf16>
    %c640 = arith.constant 640 : index
    %c0_98 = arith.constant 0 : index
    %119 = vector.load %arg5[%c640, %c0_98] : memref<1152x128xbf16, #tpu.memory_space<vmem>>, vector<128x128xbf16>
    %cst_99 = arith.constant dense<0.000000e+00> : vector<64x128xf32>
    %120 = tpu.matmul %118, %119, %cst_99 {dimension_numbers = #tpu.dot_dimension_numbers<[1], [0], [0], [1], [0, 0, 1, 1], [], []>} : vector<64x128xbf16>, vector<128x128xbf16>, vector<64x128xf32> -> vector<64x128xf32>
    %121 = arith.addf %116, %120 : vector<64x128xf32>
    %c2_100 = arith.constant 2 : index
    %c0_101 = arith.constant 0 : index
    %c0_102 = arith.constant 0 : index
    %122 = vector.load %arg10[%c2_100, %c0_101, %c0_102] : memref<10x10x128xbf16, #tpu.memory_space<vmem>>, vector<8x8x128xbf16>
    %123 = vector.shape_cast %122 : vector<8x8x128xbf16> to vector<64x128xbf16>
    %c768 = arith.constant 768 : index
    %c0_103 = arith.constant 0 : index
    %124 = vector.load %arg5[%c768, %c0_103] : memref<1152x128xbf16, #tpu.memory_space<vmem>>, vector<128x128xbf16>
    %cst_104 = arith.constant dense<0.000000e+00> : vector<64x128xf32>
    %125 = tpu.matmul %123, %124, %cst_104 {dimension_numbers = #tpu.dot_dimension_numbers<[1], [0], [0], [1], [0, 0, 1, 1], [], []>} : vector<64x128xbf16>, vector<128x128xbf16>, vector<64x128xf32> -> vector<64x128xf32>
    %126 = arith.addf %121, %125 : vector<64x128xf32>
    %c2_105 = arith.constant 2 : index
    %c1_106 = arith.constant 1 : index
    %c0_107 = arith.constant 0 : index
    %127 = vector.load %arg10[%c2_105, %c1_106, %c0_107] : memref<10x10x128xbf16, #tpu.memory_space<vmem>>, vector<8x8x128xbf16>
    %128 = vector.shape_cast %127 : vector<8x8x128xbf16> to vector<64x128xbf16>
    %c896 = arith.constant 896 : index
    %c0_108 = arith.constant 0 : index
    %129 = vector.load %arg5[%c896, %c0_108] : memref<1152x128xbf16, #tpu.memory_space<vmem>>, vector<128x128xbf16>
    %cst_109 = arith.constant dense<0.000000e+00> : vector<64x128xf32>
    %130 = tpu.matmul %128, %129, %cst_109 {dimension_numbers = #tpu.dot_dimension_numbers<[1], [0], [0], [1], [0, 0, 1, 1], [], []>} : vector<64x128xbf16>, vector<128x128xbf16>, vector<64x128xf32> -> vector<64x128xf32>
    %131 = arith.addf %126, %130 : vector<64x128xf32>
    %c2_110 = arith.constant 2 : index
    %c2_111 = arith.constant 2 : index
    %c0_112 = arith.constant 0 : index
    %132 = vector.load %arg10[%c2_110, %c2_111, %c0_112] : memref<10x10x128xbf16, #tpu.memory_space<vmem>>, vector<8x8x128xbf16>
    %133 = vector.shape_cast %132 : vector<8x8x128xbf16> to vector<64x128xbf16>
    %c1024 = arith.constant 1024 : index
    %c0_113 = arith.constant 0 : index
    %134 = vector.load %arg5[%c1024, %c0_113] : memref<1152x128xbf16, #tpu.memory_space<vmem>>, vector<128x128xbf16>
    %cst_114 = arith.constant dense<0.000000e+00> : vector<64x128xf32>
    %135 = tpu.matmul %133, %134, %cst_114 {dimension_numbers = #tpu.dot_dimension_numbers<[1], [0], [0], [1], [0, 0, 1, 1], [], []>} : vector<64x128xbf16>, vector<128x128xbf16>, vector<64x128xf32> -> vector<64x128xf32>
    %136 = arith.addf %131, %135 : vector<64x128xf32>
    %c0_115 = arith.constant 0 : index
    %c0_116 = arith.constant 0 : index
    %c0_117 = arith.constant 0 : index
    %137 = vector.load %arg9[%c0_115, %c0_116, %c0_117] : memref<1x64x128xf32, #tpu.memory_space<vmem>>, vector<1x64x128xf32>
    %138 = vector.shape_cast %137 : vector<1x64x128xf32> to vector<64x128xf32>
    %139 = vector.shape_cast %136 : vector<64x128xf32> to vector<1x64x128xf32>
    tpu.vector_store %arg9[%c0_115, %c0_116, %c0_117], %139 {strides = array<i32>} : memref<1x64x128xf32, #tpu.memory_space<vmem>>, vector<1x64x128xf32>,
    return
  }
  func.func @transform_0(%arg0: i32, %arg1: i32) -> (i32, i32, i32, i32) {
    %c0_i32 = arith.constant 0 : i32
    %c0_i32_0 = arith.constant 0 : i32
    %c0_i32_1 = arith.constant 0 : i32
    %c0_i32_2 = arith.constant 0 : i32
    return %arg0, %c0_i32, %c0_i32_0, %c0_i32_1 : i32, i32, i32, i32
  }
  func.func @transform_1(%arg0: i32, %arg1: i32) -> (i32, i32) {
    %c0_i32 = arith.constant 0 : i32
    %c0_i32_0 = arith.constant 0 : i32
    %c0_i32_1 = arith.constant 0 : i32
    return %c0_i32, %c0_i32_0 : i32, i32
  }
  func.func @transform_2(%arg0: i32, %arg1: i32) -> (i32, i32) {
    %c0_i32 = arith.constant 0 : i32
    %c0_i32_0 = arith.constant 0 : i32
    %c0_i32_1 = arith.constant 0 : i32
    return %c0_i32, %c0_i32_0 : i32, i32
  }
  func.func @transform_3(%arg0: i32, %arg1: i32) -> (i32, i32) {
    %c0_i32 = arith.constant 0 : i32
    %c0_i32_0 = arith.constant 0 : i32
    %c0_i32_1 = arith.constant 0 : i32
    return %c0_i32, %c0_i32_0 : i32, i32
  }
  func.func @transform_4(%arg0: i32, %arg1: i32) -> (i32, i32) {
    %c0_i32 = arith.constant 0 : i32
    %c0_i32_0 = arith.constant 0 : i32
    %c0_i32_1 = arith.constant 0 : i32
    return %c0_i32, %c0_i32_0 : i32, i32
  }
  func.func @transform_5(%arg0: i32, %arg1: i32) -> (i32, i32) {
    %c0_i32 = arith.constant 0 : i32
    %c0_i32_0 = arith.constant 0 : i32
    %c0_i32_1 = arith.constant 0 : i32
    return %c0_i32, %c0_i32_0 : i32, i32
  }
  func.func @transform_6(%arg0: i32, %arg1: i32) -> (i32, i32) {
    %c0_i32 = arith.constant 0 : i32
    %c0_i32_0 = arith.constant 0 : i32
    %c0_i32_1 = arith.constant 0 : i32
    return %c0_i32, %c0_i32_0 : i32, i32
  }
  func.func @transform_7(%arg0: i32, %arg1: i32) -> (i32, i32, i32) {
    %c0_i32 = arith.constant 0 : i32
    %c0_i32_0 = arith.constant 0 : i32
    return %arg0, %arg1, %c0_i32 : i32, i32, i32
  }
}

</mosaic_0001>

<bundles_post_ra>
// kernel: basic_block_pallas.1
= control target key start
LH: loop header
LB: loop body
LE: loop exit
PB: predicated region body
PF: predicated region fallthrough
CT: control target
= control target key end

     0   :  { %s5042_s24 = smov 0   ;;  %s5044_s25 = smov 0   ;;  %s6100_s0 = inlined_call_operand.vmem [shape: bf16[2,44,9,4], index: 0, kind: input, shape index: {}]   ;;  %s6101_s1 = inlined_call_operand.vmem [shape: bf16[36,128], index: 1, kind: input, shape index: {}]   ;;  %s6102_s2 = inlined_call_operand.vmem [shape: f32[1,128], index: 2, kind: input, shape index: {}]   ;;  %s6103_s3 = inlined_call_operand.vmem [shape: bf16[1152,128], index: 3, kind: input, shape index: {}]   ;;  %s6104_s4 = inlined_call_operand.vmem [shape: f32[1,128], index: 4, kind: input, shape index: {}]   ;;  %s6105_s5 = inlined_call_operand.vmem [shape: bf16[4,128], index: 5, kind: input, shape index: {}]   ;;  %s6106_s6 = inlined_call_operand.vmem [shape: f32[1,128], index: 6, kind: input, shape index: {}]   ;;  %s6107_s7 = inlined_call_operand.vmem [shape: f32[2,64,128], index: 7, kind: output, shape index: {}]  }
   0x1   :  { %s5046_s26 = smov 0  }
   0x2 LB: > { %s29_s27 = sadd.s32 1, %s4985_s25  ;;  %p3957_p0 = scmp.ge.s32.totalorder %s4989_s26, 1  ;;  %s4989_s26 = sphi %s5046_s26, %s17_s26   ;;  %s4985_s25 = sphi %s5044_s25, %s6119_s25   ;;  %s4981_s24 = sphi %s5042_s24, %s6118_s24  }
   0x3   : > { %p31_p1 = scmp.ge.s32.totalorder %s29_s27, 2  ;;  %p251_p2 = scmp.lt.s32.totalorder %s4989_s26, 3 }
   0x5   : > { %s6121_s27 = smov (%p31_p1, %s29_s27), 0  ;;  %p252_p3 = pnand %p3957_p0, %p251_p2 }
   0x6   : > { %p287_p4 = scmp.lt.s32.totalorder (!%p252_p3), %s4981_s24, 1  ;;  %s4991_s9 = smov (!%p252_p3), 12   ;;  %v4862_v29 = vld [vmem:[%s6101_s1] sm:$0xff] (!%p252_p3)   ;;  %v4995_v36 = vmov (!%p252_p3), 0.0   ;;  %v4867_v44 = vld [vmem:[%s6101_s1 + $0x8] sm:$0xff] (!%p252_p3)   ;;  %vm5000_vm0 = vmmov (!%p252_p3), 0  }
   0x7   : > { %255 = sbr.rel (%p252_p3) target bundleno = 869 (0x365), region = 48  ;;  %s4992_s10 = smov (!%p252_p3), 4   ;;  %4417 = vmatprep.subr.bf16.mxu0 (!%p252_p3), %v4995_v36  ;;  %4423 = vmatprep.mubr.msk.bf16.mxu0 (!%p252_p3), %vm5000_vm0, %v4995_v36  ;;  %vm1293_vm1 = vcmask (!%p252_p3), 1041408   ;;  %vm1047_vm2 = vcmask (!%p252_p3), 31744   ;;  %vm1078_vm3 = vcmask (!%p252_p3), 64512   ;;  %vm1099_vm4 = vcmask (!%p252_p3), 97280  }
   0x8   : > { %s4993_s11 = smov (!%p252_p3), 16   ;;  %s4994_s14 = smov (!%p252_p3), 8   ;;  %4418 = vmatpush3.bf16.msra.mxu0 (!%p252_p3), %v4862_v29  ;;  %vm1120_vm5 = vcmask (!%p252_p3), 130048   ;;  %vm1141_vm6 = vcmask (!%p252_p3), 162816   ;;  %vm1162_vm7 = vcmask (!%p252_p3), 195584   ;;  %vm1183_vm8 = vcmask (!%p252_p3), 228352  }
   0x9   : > { %4419 = vmatprep.subr.bf16.mxu0 (!%p252_p3), %v4995_v36  ;;  %s4996_s15 = smov (!%p252_p3), 20   ;;  %s4997_s18 = smov (!%p252_p3), 24   ;;  %vm1204_vm9 = vcmask (!%p252_p3), 261120   ;;  %vm1277_vm10 = vcmask (!%p252_p3), 293888   ;;  %vm1461_vm11 = vcmask (!%p252_p3), 1040384  }
   0xa   : > { %s4998_s19 = smov (!%p252_p3), 28   ;;  %s4999_s20 = smov (!%p252_p3), 32   ;;  %vm1462_vm12 = vsmask.f32 (!%p252_p3), 256  ;;  %vm1494_vm13 = vsmask.f32 (!%p252_p3), 7938 }
   0xb   : > { %vm5448_vm14 = vmand (!%p252_p3), %vm1461_vm11, %vm1462_vm12 }
   0xc   : > { %4420 = vmatpush3.bf16.msra.mxu0 (!%p252_p3), %v4867_v44  ;;  %vm5457_vm15 = vmand (!%p252_p3), %vm1461_vm11, %vm1494_vm13  ;;  %vm1656_vm11 = vcmask (!%p252_p3), 1043456  }
   0xd   : > { %4421 = vmatprep.subr.bf16.mxu0 (!%p252_p3), %v4995_v36  ;;  %vm5481_vm12 = vmand (!%p252_p3), %vm1656_vm11, %vm1494_vm13 }
   0xe   : > { %s6123_s24 = smov (!%p287_p4, %s4981_s24), 1 }
   0xf   : > { %s4758_s28 = smul.u32 352, %s6123_s24 }
  0x11   : > { %s5066_s8 = scalar_lea.vmem %s6100_s0, %s4758_s28  ;;  %s4287_s28 = sshll.u32 %s6123_s24, 6 }
  0x12   : > { %v3972_v0 = vld [vmem:[%s5066_s8 + $0xb8] sm:$0xf]  ;;  %v3992_v1 = vld [vmem:[%s5066_s8 + $0xbc] sm:$0x1]  ;;  %v4797_v4 = vld [vmem:[%s5066_s8 + $0x110] ss:$0 sps:$4 sm:$0xff]  }
  0x13   : > { %v4052_v2 = vcombine.low %v3972_v0, %v3972_v0  ;;  %v4796_v3 = vld [vmem:[%s5066_s8 + $0x58] ss:$0 sps:$4 sm:$0xff]   ;;  %v4798_v5 = vld [vmem:[%s5066_s8 + $0x60] ss:$0 sps:$4 sm:$0xff]   ;;  %v3971_v6 = vld [vmem:[%s5066_s8 + $0xb0] sm:$0xf]  ;;  %v4072_v11 = vcombine.low %v3972_v0, %v3992_v1 }
  0x14   : > { %447 = vrot.lane.b32.xlu0 %v4796_v3, %s4992_s10  ;;  %v3991_v7 = vld [vmem:[%s5066_s8 + $0xb4] sm:$0x1]  ;;  %v5078_v8 = vld [vmem:[%s5066_s8] sm:$0xf]  ;;  %v331_v10 = vld [vmem:[%s5066_s8 + $0x4] sm:$0x1]  ;;  %v4051_v16 = vcombine.low %v3971_v6, %v3971_v6 }
  0x15   : > { %639 = vrot.lane.b32.xlu1 %v4052_v2, %s4991_s9  ;;  %v4071_v9 = vcombine.low %v3971_v6, %v3991_v7  ;;  %v4041_v12 = vcombine.low %v5078_v8, %v331_v10  ;;  %v5083_v13 = vld [vmem:[%s5066_s8 + $0x8] sm:$0xf]  ;;  %v332_v14 = vld [vmem:[%s5066_s8 + $0xc] sm:$0x1]  ;;  %v747_v21 = vshll.u32 %v4072_v11, 16  ;;  %v745_v31 = vshrl.u32 %v4072_v11, 16 }
  0x16   : > { %v4042_v15 = vcombine.low %v5083_v13, %v332_v14  ;;  %v4802_v24 = vld [vmem:[%s5066_s8 + $0x108] ss:$0 sps:$4 sm:$0xff]   ;;  %v4021_v30 = vld [vmem:[%s5066_s8 + $0xc] sm:$0x1]  ;;  %v4022_v35 = vld [vmem:[%s5066_s8 + $0x14] sm:$0x1] }
  0x17   : > { %v518_v17 = vshrl.u32 %v4041_v12, 16  ;;  %v520_v18 = vshll.u32 %v4041_v12, 16  ;;  %v740_v19 = vshll.u32 %v4071_v9, 16  ;;  %v738_v27 = vshrl.u32 %v4071_v9, 16  ;;  %v4001_v34 = vld [vmem:[%s5066_s8 + $0x8] sm:$0xf] }
  0x18   : > { %449 = vrot.lane.b32.xlu0 %v4798_v5, %s4992_s10  ;;  %v527_v20 = vshll.u32 %v4042_v15, 16  ;;  %v525_v23 = vshrl.u32 %v4042_v15, 16  ;;  %v749_v33 = vrot.slane %v747_v21, 1  ;;  %v4101_v38 = vcombine.low %v4001_v34, %v4021_v30  ;;  %v4002_v39 = vld [vmem:[%s5066_s8 + $0x10] sm:$0xf] }
  0x19   : > { %689 = vrot.lane.b32.xlu1 %v4797_v4, %s4993_s11  ;;  %v522_v22 = vrot.slane %v520_v18, 1  ;;  %v742_v28 = vrot.slane %v740_v19, 1  ;;  %v4102_v41 = vcombine.low %v4002_v39, %v4022_v35  ;;  %v4081_v42 = vcombine.low %v4001_v34, %v4001_v34  ;;  %v309_v45 = vld [vmem:[%s5066_s8 + $0x10] sm:$0xf]  ;;  %v333_v46 = vld [vmem:[%s5066_s8 + $0x14] sm:$0x1] }
  0x1a   : > { %v529_v25 = vrot.slane %v527_v20, 1  ;;  %v750_v40 = vor.u32 %v749_v33, %v745_v31  ;;  %v960_v43 = vshll.u32 %v4101_v38, 16  ;;  %v4082_v47 = vcombine.low %v4002_v39, %v4002_v39  ;;  %v310_v49 = vld [vmem:[%s5066_s8 + $0x18] sm:$0xf]  ;;  %v334_v50 = vld [vmem:[%s5066_s8 + $0x1c] sm:$0x1] }
  0x1b   : > { %v523_v26 = vor.u32 %v522_v22, %v518_v17  ;;  %v743_v37 = vor.u32 %v742_v28, %v738_v27  ;;  %v967_v48 = vshll.u32 %v4102_v41, 16  ;;  %v4808_v51 = vld [vmem:[%s5066_s8 + $0x60] ss:$0 sps:$4 sm:$0xff]   ;;  %v958_v52 = vshrl.u32 %v4101_v38, 16  ;;  %v4809_v55 = vld [vmem:[%s5066_s8 + $0x68] ss:$0 sps:$4 sm:$0xff]  }
  0x1c   : > { %637 = vrot.lane.b32.xlu0 %v4051_v16, %s4991_s9  ;;  %v530_v32 = vor.u32 %v529_v25, %v525_v23  ;;  %v962_v53 = vrot.slane %v960_v43, 1  ;;  %v4043_v54 = vcombine.low %v309_v45, %v333_v46  ;;  %v965_v56 = vshrl.u32 %v4102_v41, 16  ;;  %v4810_v63 = vld [vmem:[%s5066_s8 + $0x68] ss:$0 sps:$4 sm:$0xff]   ;;  %v4811_v2 = vld [vmem:[%s5066_s8 + $0x70] ss:$0 sps:$4 sm:$0xff]  }
  0x1d   : > { %587 = vrot.lane.b32.xlu1 %v523_v26, %s4994_s14  ;;  %v969_v57 = vrot.slane %v967_v48, 1  ;;  %v4044_v58 = vcombine.low %v310_v49, %v334_v50  ;;  %v3993_v3 = vld [vmem:[%s5066_s8 + $0xc4] sm:$0x1]  ;;  %v3994_v6 = vld [vmem:[%s5066_s8 + $0xcc] sm:$0x1] }
  0x1e   : > { %v963_v59 = vor.u32 %v962_v53, %v958_v52  ;;  %v534_v60 = vshll.u32 %v4043_v54, 16  ;;  %v532_v0 = vshrl.u32 %v4043_v54, 16  ;;  %v3973_v7 = vld [vmem:[%s5066_s8 + $0xc0] sm:$0xf]  ;;  %v3974_v11 = vld [vmem:[%s5066_s8 + $0xc8] sm:$0xf] }
  0x1f   : > { %v970_v61 = vor.u32 %v969_v57, %v965_v56  ;;  %v541_v62 = vshll.u32 %v4044_v58, 16  ;;  %v539_v4 = vshrl.u32 %v4044_v58, 16  ;;  %v4073_v10 = vcombine.low %v3973_v7, %v3993_v3  ;;  %v5133_v17 = vld [vmem:[%s5066_s8 + $0x18] sm:$0xf]  ;;  %v4023_v18 = vld [vmem:[%s5066_s8 + $0x1c] sm:$0x1] }
  0x20   : > { %687 = vrot.lane.b32.xlu0 %v4802_v24, %s4993_s11  ;;  %v536_v1 = vrot.slane %v534_v60, 1  ;;  %v4074_v12 = vcombine.low %v3974_v11, %v3994_v6  ;;  %v4053_v15 = vcombine.low %v3973_v7, %v3973_v7  ;;  %v4024_v20 = vld [vmem:[%s5066_s8 + $0x24] sm:$0x1]  ;;  %v4054_v21 = vcombine.low %v3974_v11, %v3974_v11  ;;  %v5139_v22 = vld [vmem:[%s5066_s8 + $0x20] sm:$0xf] }
  0x21   : > { %589 = vrot.lane.b32.xlu1 %v530_v32, %s4994_s14  ;;  %v543_v5 = vrot.slane %v541_v62, 1  ;;  %v754_v16 = vshll.u32 %v4073_v10, 16  ;;  %v335_v23 = vld [vmem:[%s5066_s8 + $0x24] sm:$0x1]  ;;  %v4818_v24 = vld [vmem:[%s5066_s8 + $0x118] ss:$0 sps:$4 sm:$0xff]   ;;  %v5144_v25 = vcombine.low %v5133_v17, %v4023_v18 }
  0x22   : > { %v537_v9 = vor.u32 %v536_v1, %v532_v0  ;;  %v761_v19 = vshll.u32 %v4074_v12, 16  ;;  %v4819_v26 = vld [vmem:[%s5066_s8 + $0x120] ss:$0 sps:$4 sm:$0xff]   ;;  %v752_v27 = vshrl.u32 %v4073_v10, 16  ;;  %v759_v30 = vshrl.u32 %v4074_v12, 16 }
  0x23   : > { %v544_v14 = vor.u32 %v543_v5, %v539_v4  ;;  %v756_v28 = vrot.slane %v754_v16, 1  ;;  %v5149_v29 = vld [vmem:[%s5066_s8 + $0x20] sm:$0xf]  ;;  %v5155_v33 = vcombine.low %v5139_v22, %v335_v23  ;;  %v5158_v34 = vld [vmem:[%s5066_s8 + $0x28] sm:$0xf]  ;;  %v972_v39 = vshrl.u32 %v5144_v25, 16 }
  0x24   : > { %807 = vrot.lane.b32.xlu0 %v743_v37, %s4996_s15  ;;  %v763_v31 = vrot.slane %v761_v19, 1  ;;  %v5152_v32 = vcombine.low %v5149_v29, %v4024_v20  ;;  %v336_v35 = vld [vmem:[%s5066_s8 + $0x2c] sm:$0x1]  ;;  %v3995_v37 = vld [vmem:[%s5066_s8 + $0xd4] sm:$0x1]  ;;  %v4084_v5 = vcombine.low %v5149_v29, %v5149_v29 }
  0x25   : > { %809 = vrot.lane.b32.xlu1 %v750_v40, %s4996_s15  ;;  %v3996_v38 = vld [vmem:[%s5066_s8 + $0xdc] sm:$0x1]  ;;  %v974_v40 = vshll.u32 %v5144_v25, 16  ;;  %v5167_v41 = vld [vmem:[%s5066_s8 + $0xd0] sm:$0xf]  ;;  %v5171_v43 = vcombine.low %v5158_v34, %v336_v35  ;;  %v546_v7 = vshrl.u32 %v5155_v33, 16 }
  0x26   : > { %v5174_v44 = vld [vmem:[%s5066_s8 + $0xd8] sm:$0xf]  ;;  %v4025_v45 = vld [vmem:[%s5066_s8 + $0x2c] sm:$0x1]  ;;  %v981_v46 = vshll.u32 %v5152_v32, 16  ;;  %v5180_v48 = vcombine.low %v5167_v41, %v3995_v37 }
  0x27   : > { %v5183_v49 = vcombine.low %v5174_v44, %v3996_v38  ;;  %v4026_v50 = vld [vmem:[%s5066_s8 + $0x34] sm:$0x1]  ;;  %v5188_v52 = vld [vmem:[%s5066_s8 + $0x28] sm:$0xf]  ;;  %v5191_v53 = vld [vmem:[%s5066_s8 + $0x30] sm:$0xf] }
  0x28   : > { %857 = vrot.lane.b32.xlu0 %v4081_v42, %s4997_s18  ;;  %v757_v42 = vor.u32 %v756_v28, %v752_v27  ;;  %v337_v54 = vld [vmem:[%s5066_s8 + $0x34] sm:$0x1]  ;;  %v5197_v56 = vcombine.low %v5188_v52, %v4025_v45  ;;  %v5200_v57 = vld [vmem:[%s5066_s8 + $0x30] sm:$0xf]  ;;  %v5203_v58 = vld [vmem:[%s5066_s8 + $0x38] sm:$0xf] }
  0x29   : > { %859 = vrot.lane.b32.xlu1 %v4082_v47, %s4997_s18  ;;  %v548_v47 = vshll.u32 %v5155_v33, 16  ;;  %v976_v60 = vrot.slane %v974_v40, 1  ;;  %v555_v62 = vshll.u32 %v5171_v43, 16  ;;  %v3997_v0 = vld [vmem:[%s5066_s8 + $0xe4] sm:$0x1]  ;;  %v983_v1 = vrot.slane %v981_v46, 1 }
  0x2a   : > { %v775_v3 = vshll.u32 %v5183_v49, 16  ;;  %v5216_v4 = vcombine.low %v5191_v53, %v337_v54  ;;  %v4824_v6 = vld [vmem:[%s5066_s8 + $0x70] ss:$0 sps:$4 sm:$0xff]   ;;  %v5227_v10 = vld [vmem:[%s5066_s8 + $0xe0] sm:$0xf]  ;;  %v553_v12 = vshrl.u32 %v5171_v43, 16 }
  0x2b   : > { %v550_v11 = vrot.slane %v548_v47, 1  ;;  %v4870_v16 = vld [vmem:[%s6101_s1 + $0x10] ss:$0 sps:$4 sm:$0x33]   ;;  %v766_v18 = vshrl.u32 %v5180_v48, 16  ;;  %v773_v19 = vshrl.u32 %v5183_v49, 16  ;;  %v977_v38 = vor.u32 %v976_v60, %v972_v39 }
  0x2c   : > { %907 = vrot.lane.b32.xlu0 %v4808_v51, %s4998_s19  ;;  %v764_v51 = vor.u32 %v763_v31, %v759_v30  ;;  %v4825_v23 = vld [vmem:[%s5066_s8 + $0x78] ss:$0 sps:$4 sm:$0xff]   ;;  %v562_v27 = vshll.u32 %v5216_v4, 16  ;;  %v1295_v28 = vsel %vm1293_vm1, %v4870_v16, 0  ;;  %v986_v29 = vshrl.u32 %v5197_v56, 16 }
  0x2d   : > { %909 = vrot.lane.b32.xlu1 %v4809_v55, %s4998_s19  ;;  %v4083_v55 = vcombine.low %v5133_v17, %v5133_v17  ;;  %v557_v17 = vrot.slane %v555_v62, 1  ;;  %v5249_v31 = vld [vmem:[%s5066_s8 + $0xe8] sm:$0xf]  ;;  %4422 = vmatpush3.bf16.msra.mxu0 %v1295_v28  ;;  %v4826_v47 = vld [vmem:[%s5066_s8 + $0x78] ss:$0 sps:$4 sm:$0xff]   ;;  %v551_v39 = vor.u32 %v550_v11, %v546_v7  ;;  %v4085_v62 = vcombine.low %v5188_v52, %v5188_v52 }
  0x2e   : > { %v564_v43 = vrot.slane %v562_v27, 1  ;;  %v4827_v25 = vld [vmem:[%s5066_s8 + $0x80] ss:$0 sps:$4 sm:$0xff]   ;;  %v4835_v60 = vld [vmem:[%s5066_s8 + $0x130] ss:$0 sps:$4 sm:$0xff]  }
  0x2f   : > { %v558_v54 = vor.u32 %v557_v17, %v553_v12  ;;  %v4842_v52 = vld [vmem:[%s5066_s8 + $0x88] ss:$0 sps:$4 sm:$0xff]   ;;  %v4850_v7 = vld [vmem:[%s5066_s8 + $0x138] ss:$0 sps:$4 sm:$0xff]   ;;  %v4851_v11 = vld [vmem:[%s5066_s8 + $0x140] ss:$0 sps:$4 sm:$0xff]  }
  0x30   : > { %1027 = vrot.lane.b32.xlu0 %v963_v59, %s4999_s20  ;;  %v338_v59 = vld [vmem:[%s5066_s8 + $0x3c] sm:$0x1]  ;;  %v4028_v16 = vld [vmem:[%s5066_s8 + $0x44] sm:$0x1] }
  0x31   : > { %1029 = vrot.lane.b32.xlu1 %v970_v61, %s4999_s20  ;;  %v979_v61 = vshrl.u32 %v5152_v32, 16 }
  0x33   : > { %v984_v46 = vor.u32 %v983_v1, %v979_v61 }
  0x34   : > { %451 = vrot.lane.b32.xlu0 %v4810_v63, %s4992_s10  ;;  %v5210_v63 = vcombine.low %v5200_v57, %v4026_v50 }
  0x35   : > { %453 = vrot.lane.b32.xlu1 %v4811_v2, %s4992_s10  ;;  %v768_v2 = vshll.u32 %v5180_v48, 16 }
  0x36   : > { %v995_v20 = vshll.u32 %v5210_v63, 16  ;;  %v993_v33 = vshrl.u32 %v5210_v63, 16  ;;  %v4840_v63 = vld [vmem:[%s5066_s8 + $0x80] ss:$0 sps:$4 sm:$0xff]  }
  0x38   : > { %591 = vrot.lane.b32.xlu0 %v537_v9, %s4994_s14  ;;  %v5224_v9 = vcombine.low %v5203_v58, %v338_v59  ;;  %v997_v40 = vrot.slane %v995_v20, 1  ;;  %v4834_v59 = vld [vmem:[%s5066_s8 + $0x128] ss:$0 sps:$4 sm:$0xff]  }
  0x39   : > { %593 = vrot.lane.b32.xlu1 %v544_v14, %s4994_s14  ;;  %v988_v14 = vshll.u32 %v5197_v56, 16  ;;  %v4056_v56 = vcombine.low %v5174_v44, %v5174_v44  ;;  %v4086_v44 = vcombine.low %v5200_v57, %v5200_v57 }
  0x3a   : > { %v569_v30 = vshll.u32 %v5224_v9, 16  ;;  %v567_v45 = vshrl.u32 %v5224_v9, 16  ;;  %v4027_v9 = vld [vmem:[%s5066_s8 + $0x3c] sm:$0x1] }
  0x3b   : > { %v990_v32 = vrot.slane %v988_v14, 1 }
  0x3c   : > { %641 = vrot.lane.b32.xlu0 %v4053_v15, %s4991_s9  ;;  %v5232_v15 = vcombine.low %v5227_v10, %v3997_v0  ;;  %v571_v48 = vrot.slane %v569_v30, 1  ;;  %v4841_v0 = vld [vmem:[%s5066_s8 + $0x88] ss:$0 sps:$4 sm:$0xff]  }
  0x3d   : > { %643 = vrot.lane.b32.xlu1 %v4054_v21, %s4991_s9  ;;  %v3998_v21 = vld [vmem:[%s5066_s8 + $0xec] sm:$0x1]  ;;  %v991_v1 = vor.u32 %v990_v32, %v986_v29 }
  0x3e   : > { %v5253_v35 = vcombine.low %v5249_v31, %v3998_v21  ;;  %v782_v37 = vshll.u32 %v5232_v15, 16  ;;  %v780_v49 = vshrl.u32 %v5232_v15, 16  ;;  %v4007_v15 = vld [vmem:[%s5066_s8 + $0x38] sm:$0xf]  ;;  %v340_v32 = vld [vmem:[%s5066_s8 + $0x4c] sm:$0x1] }
  0x3f   : > { %v4107_v17 = vcombine.low %v4007_v15, %v4027_v9  ;;  %v4087_v21 = vcombine.low %v4007_v15, %v4007_v15 }
  0x40   : > { %691 = vrot.lane.b32.xlu0 %v4818_v24, %s4993_s11  ;;  %v770_v24 = vrot.slane %v768_v2, 1  ;;  %v784_v50 = vrot.slane %v782_v37, 1  ;;  %v998_v2 = vor.u32 %v997_v40, %v993_v33  ;;  %v787_v12 = vshrl.u32 %v5253_v35, 16  ;;  %v4856_v33 = vld [vmem:[%s5066_s8 + $0x90] ss:$0 sps:$4 sm:$0xff]  }
  0x41   : > { %693 = vrot.lane.b32.xlu1 %v4819_v26, %s4993_s11  ;;  %v777_v26 = vrot.slane %v775_v3, 1  ;;  %v4843_v3 = vld [vmem:[%s5066_s8 + $0x90] ss:$0 sps:$4 sm:$0xff]  }
  0x42   : > { %v771_v61 = vor.u32 %v770_v24, %v766_v18  ;;  %v4008_v18 = vld [vmem:[%s5066_s8 + $0x40] sm:$0xf] }
  0x43   : > { %v4108_v20 = vcombine.low %v4008_v18, %v4028_v16  ;;  %v5319_v24 = vld [vmem:[%s5066_s8 + $0x40] sm:$0xf]  ;;  %v4088_v29 = vcombine.low %v4008_v18, %v4008_v18  ;;  %v4868_v18 = vld [vmem:[%s5066_s8 + $0x148] ss:$0 sps:$4 sm:$0xff]  }
  0x44   : > { %811 = vrot.lane.b32.xlu0 %v757_v42, %s4996_s15  ;;  %v560_v42 = vshrl.u32 %v5216_v4, 16  ;;  %v572_v4 = vor.u32 %v571_v48, %v567_v45 }
  0x45   : > { %813 = vrot.lane.b32.xlu1 %v764_v51, %s4996_s15  ;;  %v789_v51 = vshll.u32 %v5253_v35, 16  ;;  %v1009_v30 = vshll.u32 %v4108_v20, 16  ;;  %v1000_v35 = vshrl.u32 %v4107_v17, 16  ;;  %v1007_v45 = vshrl.u32 %v4108_v20, 16 }
  0x46   : > { %v565_v57 = vor.u32 %v564_v43, %v560_v42  ;;  %v4857_v43 = vld [vmem:[%s5066_s8 + $0x98] ss:$0 sps:$4 sm:$0xff]  }
  0x47   : > { %v791_v14 = vrot.slane %v789_v51, 1 }
  0x48   : > { %861 = vrot.lane.b32.xlu0 %v4083_v55, %s4997_s18  ;;  %v4055_v55 = vcombine.low %v5167_v41, %v5167_v41  ;;  %v778_v41 = vor.u32 %v777_v26, %v773_v19  ;;  %v339_v26 = vld [vmem:[%s5066_s8 + $0x44] sm:$0x1] }
  0x49   : > { %863 = vrot.lane.b32.xlu1 %v4084_v5, %s4997_s18  ;;  %v4057_v5 = vcombine.low %v5227_v10, %v5227_v10  ;;  %v785_v10 = vor.u32 %v784_v50, %v780_v49  ;;  %v792_v19 = vor.u32 %v791_v14, %v787_v12 }
  0x4c   : > { %911 = vrot.lane.b32.xlu0 %v4824_v6, %s4998_s19  ;;  %v4058_v6 = vcombine.low %v5249_v31, %v5249_v31  ;;  %v5326_v31 = vld [vmem:[%s5066_s8 + $0x48] sm:$0xf] }
  0x4d   : > { %913 = vrot.lane.b32.xlu1 %v4825_v23, %s4998_s19  ;;  %v1002_v23 = vshll.u32 %v4107_v17, 16 }
  0x4f   : > { %v1004_v37 = vrot.slane %v1002_v23, 1 }
  0x50   : > { %1031 = vrot.lane.b32.xlu0 %v977_v38, %s4999_s20  ;;  %v4049_v38 = vcombine.low %v5319_v24, %v339_v26  ;;  %v4869_v26 = vld [vmem:[%s5066_s8 + $0x150] ss:$0 sps:$4 sm:$0xff]  }
  0x51   : > { %1033 = vrot.lane.b32.xlu1 %v984_v46, %s4999_s20  ;;  %v1011_v46 = vrot.slane %v1009_v30, 1  ;;  %v1005_v48 = vor.u32 %v1004_v37, %v1000_v35 }
  0x52   : > { %v576_v49 = vshll.u32 %v4049_v38, 16 }
  0x53   : > { %v1012_v51 = vor.u32 %v1011_v46, %v1007_v45  ;;  %v4010_v45 = vld [vmem:[%s5066_s8 + $0x50] sm:$0xf] }
  0x54   : > { %455 = vrot.lane.b32.xlu0 %v4826_v47, %s4992_s10  ;;  %v4050_v47 = vcombine.low %v5326_v31, %v340_v32  ;;  %v4009_v32 = vld [vmem:[%s5066_s8 + $0x48] sm:$0xf] }
  0x55   : > { %457 = vrot.lane.b32.xlu1 %v4827_v25, %s4992_s10 }
  0x56   : > { %v583_v25 = vshll.u32 %v4050_v47, 16 }
  0x58   : > { %595 = vrot.lane.b32.xlu0 %v551_v39, %s4994_s14 }
  0x59   : > { %597 = vrot.lane.b32.xlu1 %v558_v54, %s4994_s14  ;;  %v4858_v54 = vld [vmem:[%s5066_s8 + $0x98] ss:$0 sps:$4 sm:$0xff]  }
  0x5c   : > { %645 = vrot.lane.b32.xlu0 %v4055_v55, %s4991_s9  ;;  %v574_v55 = vshrl.u32 %v4049_v38, 16 }
  0x5d   : > { %647 = vrot.lane.b32.xlu1 %v4056_v56, %s4991_s9  ;;  %v578_v56 = vrot.slane %v576_v49, 1 }
  0x60   : > { %695 = vrot.lane.b32.xlu0 %v4834_v59, %s4993_s11  ;;  %v3999_v59 = vld [vmem:[%s5066_s8 + $0xf4] sm:$0x1] }
  0x61   : > { %697 = vrot.lane.b32.xlu1 %v4835_v60, %s4993_s11 }
  0x64   : > { %815 = vrot.lane.b32.xlu0 %v771_v61, %s4996_s15  ;;  %v4859_v61 = vld [vmem:[%s5066_s8 + $0xa0] ss:$0 sps:$4 sm:$0xff]  }
  0x65   : > { %817 = vrot.lane.b32.xlu1 %v778_v41, %s4996_s15  ;;  %v581_v41 = vshrl.u32 %v4050_v47, 16 }
  0x68   : > { %865 = vrot.lane.b32.xlu0 %v4085_v62, %s4997_s18  ;;  %v585_v62 = vrot.slane %v583_v25, 1 }
  0x69   : > { %867 = vrot.lane.b32.xlu1 %v4086_v44, %s4997_s18  ;;  %v3979_v44 = vld [vmem:[%s5066_s8 + $0xf0] sm:$0xf] }
  0x6a   : > { %v4059_v9 = vcombine.low %v3979_v44, %v3979_v44 }
  0x6c   : > { %915 = vrot.lane.b32.xlu0 %v4840_v63, %s4998_s19  ;;  %v4000_v63 = vld [vmem:[%s5066_s8 + $0xfc] sm:$0x1] }
  0x6d   : > { %917 = vrot.lane.b32.xlu1 %v4841_v0, %s4998_s19 }
  0x70   : > { %1035 = vrot.lane.b32.xlu0 %v991_v1, %s4999_s20  ;;  %v579_v1 = vor.u32 %v578_v56, %v574_v55 }
  0x71   : > { %1037 = vrot.lane.b32.xlu1 %v998_v2, %s4999_s20  ;;  %v4079_v2 = vcombine.low %v3979_v44, %v3999_v59  ;;  %v4875_v44 = vld [vmem:[%s5066_s8 + $0xa0] ss:$0 sps:$4 sm:$0xff]  }
  0x74   : > { %459 = vrot.lane.b32.xlu0 %v4842_v52, %s4992_s10  ;;  %v3980_v52 = vld [vmem:[%s5066_s8 + $0xf8] sm:$0xf] }
  0x75   : > { %461 = vrot.lane.b32.xlu1 %v4843_v3, %s4992_s10 }
  0x78   : > { %599 = vrot.lane.b32.xlu0 %v565_v57, %s4994_s14  ;;  %v586_v57 = vor.u32 %v585_v62, %v581_v41 }
  0x79   : > { %601 = vrot.lane.b32.xlu1 %v572_v4, %s4994_s14  ;;  %v4080_v4 = vcombine.low %v3980_v52, %v4000_v63 }
  0x7b   : > { %v803_v16 = vshll.u32 %v4080_v4, 16 }
  0x7c   : > { %649 = vrot.lane.b32.xlu0 %v4057_v5, %s4991_s9 }
  0x7d   : > { %651 = vrot.lane.b32.xlu1 %v4058_v6, %s4991_s9 }
  0x80   : > { %699 = vrot.lane.b32.xlu0 %v4850_v7, %s4993_s11 }
  0x81   : > { %701 = vrot.lane.b32.xlu1 %v4851_v11, %s4993_s11  ;;  %v796_v11 = vshll.u32 %v4079_v2, 16 }
  0x83   : > { %v798_v20 = vrot.slane %v796_v11, 1 }
  0x84   : > { %819 = vrot.lane.b32.xlu0 %v785_v10, %s4996_s15 }
  0x85   : > { %821 = vrot.lane.b32.xlu1 %v792_v19, %s4996_s15  ;;  %v794_v19 = vshrl.u32 %v4079_v2, 16  ;;  %v4876_v2 = vld [vmem:[%s5066_s8 + $0xa8] ss:$0 sps:$4 sm:$0xff]  }
  0x86   : > { %v448_v28 = vpop.permute.xlu0 %447 }
  0x87   : > { %v5323_v27 = vpop.permute.xlu1 %639  ;;  %v1050_v5 = vsel %vm1047_vm2, %v5078_v8, %v448_v28  ;;  %v4060_v8 = vcombine.low %v3980_v52, %v3980_v52  ;;  %v801_v28 = vshrl.u32 %v4080_v4, 16  ;;  %v799_v38 = vor.u32 %v798_v20, %v794_v19 }
  0x88   : > { %869 = vrot.lane.b32.xlu0 %v4087_v21, %s4997_s18  ;;  %v4029_v21 = vld [vmem:[%s5066_s8 + $0x4c] sm:$0x1] }
  0x89   : > { %871 = vrot.lane.b32.xlu1 %v4088_v29, %s4997_s18  ;;  %v805_v29 = vrot.slane %v803_v16, 1 }
  0x8a   : > { %v450_v42 = vpop.permute.xlu0 %449 }
  0x8b   : > { %v5333_v40 = vpop.permute.xlu1 %689  ;;  %v1053_v6 = vsel %vm1047_vm2, %v5083_v13, %v450_v42  ;;  %v4109_v42 = vcombine.low %v4009_v32, %v4029_v21 }
  0x8c   : > { %919 = vrot.lane.b32.xlu0 %v4856_v33, %s4998_s19  ;;  %v4030_v33 = vld [vmem:[%s5066_s8 + $0x54] sm:$0x1] }
  0x8d   : > { %921 = vrot.lane.b32.xlu1 %v4857_v43, %s4998_s19  ;;  %v4110_v49 = vcombine.low %v4010_v45, %v4030_v33  ;;  %v1016_v55 = vshll.u32 %v4109_v42, 16  ;;  %v1014_v63 = vshrl.u32 %v4109_v42, 16 }
  0x8e   : > { %v638_v50 = vpop.permute.xlu0 %637 }
  0x8f   : > { %v588_v39 = vpop.permute.xlu1 %587  ;;  %v1023_v41 = vshll.u32 %v4110_v49, 16  ;;  %v1021_v52 = vshrl.u32 %v4110_v49, 16 }
  0x90   : > { %1039 = vrot.lane.b32.xlu0 %v1005_v48, %s4999_s20  ;;  %v1080_v12 = vsel %vm1078_vm3, %v1050_v5, %v588_v39  ;;  %v806_v48 = vor.u32 %v805_v29, %v801_v28 }
  0x91   : > { %1041 = vrot.lane.b32.xlu1 %v1012_v51, %s4999_s20  ;;  %v1101_v13 = vsel %vm1099_vm4, %v1080_v12, %v638_v50 }
  0x92   : > { %v688_v60 = vpop.permute.xlu0 %687 }
  0x93   : > { %v590_v0 = vpop.permute.xlu1 %589 }
  0x94   : > { %463 = vrot.lane.b32.xlu0 %v4858_v54, %s4992_s10  ;;  %v1082_v14 = vsel %vm1078_vm3, %v1053_v6, %v590_v0  ;;  %v4089_v54 = vcombine.low %v4009_v32, %v4009_v32  ;;  %v1018_v0 = vrot.slane %v1016_v55, 1 }
  0x95   : > { %465 = vrot.lane.b32.xlu1 %v4859_v61, %s4992_s10  ;;  %v1103_v10 = vsel %vm1099_vm4, %v1082_v14, %v5323_v27  ;;  %v1122_v27 = vsel %vm1120_vm5, %v1101_v13, %v688_v60  ;;  %v4090_v61 = vcombine.low %v4010_v45, %v4010_v45 }
  0x96   : > { %v808_v3 = vpop.permute.xlu0 %807  ;;  %v1124_v30 = vsel %vm1120_vm5, %v1103_v10, %v5333_v40  ;;  %v1019_v4 = vor.u32 %v1018_v0, %v1014_v63 }
  0x97   : > { %v810_v7 = vpop.permute.xlu1 %809  ;;  %v1143_v35 = vsel %vm1141_vm6, %v1122_v27, %v808_v3  ;;  %v1025_v3 = vrot.slane %v1023_v41, 1 }
  0x98   : > { %603 = vrot.lane.b32.xlu0 %v579_v1, %s4994_s14  ;;  %v1145_v46 = vsel %vm1141_vm6, %v1124_v30, %v810_v7 }
  0x99   : > { %605 = vrot.lane.b32.xlu1 %v586_v57, %s4994_s14  ;;  %v1026_v6 = vor.u32 %v1025_v3, %v1021_v52 }
  0x9a   : > { %v858_v15 = vpop.permute.xlu0 %857 }
  0x9b   : > { %v860_v17 = vpop.permute.xlu1 %859  ;;  %v1164_v43 = vsel %vm1162_vm7, %v1143_v35, %v858_v15 }
  0x9c   : > { %653 = vrot.lane.b32.xlu0 %v4059_v9, %s4991_s9  ;;  %v1166_v50 = vsel %vm1162_vm7, %v1145_v46, %v860_v17  ;;  %v4966_v17 = vld [vmem:[%s5066_s8 + $0x18] sm:$0xf] }
  0x9d   : > { %655 = vrot.lane.b32.xlu1 %v4060_v8, %s4991_s9  ;;  %v4965_v8 = vld [vmem:[%s5066_s8 + $0x10] sm:$0xf] }
  0x9e   : > { %v908_v23 = vpop.permute.xlu0 %907 }
  0x9f   : > { %v910_v37 = vpop.permute.xlu1 %909  ;;  %v1185_v47 = vsel %vm1183_vm8, %v1164_v43, %v908_v23 }
  0xa0   : > { %703 = vrot.lane.b32.xlu0 %v4868_v18, %s4993_s11  ;;  %v1187_v25 = vsel %vm1183_vm8, %v1166_v50, %v910_v37 }
  0xa1   : > { %705 = vrot.lane.b32.xlu1 %v4869_v26, %s4993_s11 }
  0xa2   : > { %v1028_v40 = vpop.permute.xlu0 %1027 }
  0xa3   : > { %v1206_v51 = vsel %vm1204_vm9, %v1185_v47, %v1028_v40  ;;  %v1030_v39 = vpop.permute.xlu1 %1029 }
  0xa4   : > { %823 = vrot.lane.b32.xlu0 %v799_v38, %s4996_s15  ;;  %v1208_v56 = vsel %vm1204_vm9, %v1187_v25, %v1030_v39 }
  0xa5   : > { %v4112_v59 = vcombine.low %v1206_v51, %v1208_v56  ;;  %825 = vrot.lane.b32.xlu1 %v806_v48, %s4996_s15 }
  0xa6   : > { %v452_v60 = vpop.permute.xlu0 %451 }
  0xa7   : > { %4424 = vmatmul.mubr.msk.bf16.vlgmr.msra.gmra.mrb[0].mxu0 %vm1277_vm10, %v4112_v59  ;;  %v454_v62 = vpop.permute.xlu1 %453  ;;  %v1056_v16 = vsel %vm1047_vm2, %v4965_v8, %v452_v60 }
  0xa8   : > { %873 = vrot.lane.b32.xlu0 %v4089_v54, %s4997_s18  ;;  %4427 = vmatprep.mubr.msk.bf16.mxu0 %vm5000_vm0, %v4995_v36  ;;  %v1059_v18 = vsel %vm1047_vm2, %v4966_v17, %v454_v62 }
  0xa9   : > { %875 = vrot.lane.b32.xlu1 %v4090_v61, %s4997_s18 }
  0xaa   : > { %v592_v1 = vpop.permute.xlu0 %591 }
  0xab   : > { %v594_v57 = vpop.permute.xlu1 %593  ;;  %v1084_v10 = vsel %vm1078_vm3, %v1056_v16, %v592_v1 }
  0xac   : > { %923 = vrot.lane.b32.xlu0 %v4875_v44, %s4998_s19  ;;  %v1086_v21 = vsel %vm1078_vm3, %v1059_v18, %v594_v57 }
  0xad   : > { %925 = vrot.lane.b32.xlu1 %v4876_v2, %s4998_s19 }
  0xae   : > { %v642_v5 = vpop.permute.xlu0 %641 }
  0xaf   : > { %v644_v7 = vpop.permute.xlu1 %643  ;;  %v1105_v19 = vsel %vm1099_vm4, %v1084_v10, %v642_v5 }
  0xb0   : > { %1043 = vrot.lane.b32.xlu0 %v1019_v4, %s4999_s20  ;;  %v1107_v26 = vsel %vm1099_vm4, %v1086_v21, %v644_v7 }
  0xb1   : > { %1045 = vrot.lane.b32.xlu1 %v1026_v6, %s4999_s20 }
  0xb2   : > { %v692_v9 = vpop.permute.xlu0 %691 }
  0xb3   : > { %v694_v11 = vpop.permute.xlu1 %693  ;;  %v1126_v23 = vsel %vm1120_vm5, %v1105_v19, %v692_v9 }
  0xb4   : > { %v1128_v27 = vsel %vm1120_vm5, %v1107_v26, %v694_v11 }
  0xb6   : > { %v812_v12 = vpop.permute.xlu0 %811 }
  0xb7   : > { %v814_v14 = vpop.permute.xlu1 %813  ;;  %v1147_v28 = vsel %vm1141_vm6, %v1126_v23, %v812_v12 }
  0xb8   : > { %v1149_v32 = vsel %vm1141_vm6, %v1128_v27, %v814_v14 }
  0xba   : > { %v862_v15 = vpop.permute.xlu0 %861 }
  0xbb   : > { %v864_v13 = vpop.permute.xlu1 %863  ;;  %v1168_v30 = vsel %vm1162_vm7, %v1147_v28, %v862_v15 }
  0xbc   : > { %v1170_v37 = vsel %vm1162_vm7, %v1149_v32, %v864_v13 }
  0xbe   : > { %v912_v20 = vpop.permute.xlu0 %911 }
  0xbf   : > { %v914_v29 = vpop.permute.xlu1 %913  ;;  %v1189_v33 = vsel %vm1183_vm8, %v1168_v30, %v912_v20 }
  0xc0   : > { %v1191_v42 = vsel %vm1183_vm8, %v1170_v37, %v914_v29 }
  0xc2   : > { %v1032_v35 = vpop.permute.xlu0 %1031 }
  0xc3   : > { %v1210_v38 = vsel %vm1204_vm9, %v1189_v33, %v1032_v35  ;;  %v1034_v43 = vpop.permute.xlu1 %1033 }
  0xc4   : > { %v1212_v45 = vsel %vm1204_vm9, %v1191_v42, %v1034_v43  ;;  %v1467_v43 = vld [vmem:[#allocation2 + $0x8] sm:$0x1]  ;;  %v4920_v42 = vld [vmem:[%s6103_s3 + $0xb0] sm:$0xff]  }
  0xc5   : > { %v4113_v46 = vcombine.low %v1210_v38, %v1212_v45  ;;  %v1499_v45 = vld [vmem:[#allocation2 + $0xc] sm:$0x1] }
  0xc6   : > { %v456_v47 = vpop.permute.xlu0 %455 }
  0xc7   : > { %4428 = vmatmul.mubr.msk.bf16.gmra.mrb[4].mxu0 %vm1277_vm10, %v4113_v46  ;;  %v458_v40 = vpop.permute.xlu1 %457  ;;  %v1062_v59 = vsel %vm1047_vm2, %v5139_v22, %v456_v47 }
  0xc8   : > { %4431 = vmatprep.mubr.msk.bf16.mxu0 %vm5000_vm0, %v4995_v36  ;;  %v1065_v41 = vsel %vm1047_vm2, %v5158_v34, %v458_v40  ;;  %v1468_v40 = vsel %vm5448_vm14, 0, %v1467_v43 }
  0xc9   : > { %1469 = vst [vmem:[#allocation2 + $0x8] sm:$0x1] %v1468_v40 }
  0xca   : > { %v596_v48 = vpop.permute.xlu0 %595 }
  0xcb   : > { %v598_v49 = vpop.permute.xlu1 %597  ;;  %v1088_v61 = vsel %vm1078_vm3, %v1062_v59, %v596_v48 }
  0xcc   : > { %v1090_v63 = vsel %vm1078_vm3, %v1065_v41, %v598_v49  ;;  %v1464_v49 = vld [vmem:[#allocation2] sm:$0x1] }
  0xce   : > { %v646_v50 = vpop.permute.xlu0 %645 }
  0xcf   : > { %v648_v51 = vpop.permute.xlu1 %647  ;;  %v1109_v62 = vsel %vm1099_vm4, %v1088_v61, %v646_v50  ;;  %v1496_v50 = vld [vmem:[#allocation2 + $0x4] sm:$0x1] }
  0xd0   : > { %v1111_v1 = vsel %vm1099_vm4, %v1090_v63, %v648_v51 }
  0xd2   : > { %v696_v25 = vpop.permute.xlu0 %695 }
  0xd3   : > { %v698_v39 = vpop.permute.xlu1 %697  ;;  %v1130_v0 = vsel %vm1120_vm5, %v1109_v62, %v696_v25  ;;  %v1500_v25 = vsel %vm5457_vm15, 0, %v1499_v45 }
  0xd4   : > { %v1132_v22 = vsel %vm1120_vm5, %v1111_v1, %v698_v39  ;;  %v1465_v39 = vsel %vm5448_vm14, 0, %v1464_v49  ;;  %1501 = vst [vmem:[#allocation2 + $0xc] sm:$0x1] %v1500_v25 }
  0xd5   : > { %1466 = vst [vmem:[#allocation2] sm:$0x1] %v1465_v39 }
  0xd6   : > { %v816_v54 = vpop.permute.xlu0 %815 }
  0xd7   : > { %v818_v55 = vpop.permute.xlu1 %817  ;;  %v1151_v2 = vsel %vm1141_vm6, %v1130_v0, %v816_v54  ;;  %v5001_v54 = vmov 0.0|0.0  }
  0xd8   : > { %v1153_v57 = vsel %vm1141_vm6, %v1132_v22, %v818_v55  ;;  %v4125_v55 = vcombine.low %v5001_v54, %v5001_v54 }
  0xda   : > { %v866_v56 = vpop.permute.xlu0 %865  ;;  %v1557_v62 = vshrl.u32 %v4125_v55, 16 }
  0xdb   : > { %v868_v60 = vpop.permute.xlu1 %867  ;;  %v1172_v3 = vsel %vm1162_vm7, %v1151_v2, %v866_v56  ;;  %v1497_v56 = vsel %vm5457_vm15, 0, %v1496_v50  ;;  %v1560_v2 = vshll.u32 %v4125_v55, 16  ;;  %v4882_v50 = vld [vmem:[%s6103_s3 + $0x20] sm:$0xff]  }
  0xdc   : > { %v1174_v5 = vsel %vm1162_vm7, %v1153_v57, %v868_v60  ;;  %1498 = vst [vmem:[#allocation2 + $0x4] sm:$0x1] %v1497_v56  ;;  %v5471_v1 = vrot.slane %v1557_v62, 7  ;;  %v4886_v62 = vld [vmem:[%s5066_s8 + $0x110] ss:$8 sps:$4 sm:$0xff]  }
  0xdd   : > { %4445 = vmatprep.mubr.msk.bf16.mxu1 %vm1047_vm2, %v4886_v62 }
  0xde   : > { %v916_v44 = vpop.permute.xlu0 %915  ;;  %v5475_v22 = vor.u32 %v1560_v2, %v5471_v1  ;;  %v4890_v2 = vld [vmem:[%s5066_s8 + $0x140] ss:$8 sps:$4 sm:$0xff]  }
  0xdf   : > { %v918_v52 = vpop.permute.xlu1 %917  ;;  %v1193_v34 = vsel %vm1183_vm8, %v1172_v3, %v916_v44  ;;  %v1563_v3 = vrot.slane %v5471_v1, 4 }
  0xe0   : > { %v1195_v7 = vsel %vm1183_vm8, %v1174_v5, %v918_v52 }
  0xe2   : > { %v1036_v4 = vpop.permute.xlu0 %1035 }
  0xe3   : > { %v1214_v6 = vsel %vm1204_vm9, %v1193_v34, %v1036_v4  ;;  %v1038_v9 = vpop.permute.xlu1 %1037  ;;  %v1658_v4 = vld [vmem:[#allocation2] sm:$0xf]  ;;  %v1661_v5 = vld [vmem:[#allocation2 + $0x4] sm:$0x1] }
  0xe4   : > { %v1216_v11 = vsel %vm1204_vm9, %v1195_v7, %v1038_v9  ;;  %v1659_v7 = vsel %vm5481_vm12, %v5475_v22, %v1658_v4  ;;  %v1508_v4 = vld [vmem:[#allocation2 + $0x24] sm:$0x1] }
  0xe5   : > { %v4114_v12 = vcombine.low %v1214_v6, %v1216_v11  ;;  %v4877_v6 = vld [vmem:[%s6103_s3] sm:$0xff]   ;;  %1660 = vst [vmem:[#allocation2] sm:$0xf] %v1659_v7  ;;  %v4892_v7 = vld [vmem:[%s6103_s3 + $0x108] sm:$0xff]  }
  0xe6   : > { %v460_v14 = vpop.permute.xlu0 %459  ;;  %4453 = vmatprep.subr.bf16.mxu0 %v4877_v6 }
  0xe7   : > { %4432 = vmatmul.mubr.msk.bf16.gmra.mrb[8].mxu0 %vm1277_vm10, %v4114_v12  ;;  %v462_v15 = vpop.permute.xlu1 %461  ;;  %v1068_v23 = vsel %vm1047_vm2, %v5191_v53, %v460_v14 }
  0xe8   : > { %4435 = vmatprep.mubr.msk.bf16.mxu0 %vm5000_vm0, %v4995_v36  ;;  %v1071_v26 = vsel %vm1047_vm2, %v5203_v58, %v462_v15  ;;  %4454 = vmatpush3.bf16.msra.mxu0 %v4877_v6  ;;  %v1509_v6 = vsel %vm5457_vm15, 0, %v1508_v4 }
  0xe9   : > { %1510 = vst [vmem:[#allocation2 + $0x24] sm:$0x1] %v1509_v6 }
  0xea   : > { %v600_v8 = vpop.permute.xlu0 %599 }
  0xeb   : > { %v602_v16 = vpop.permute.xlu1 %601  ;;  %v1092_v28 = vsel %vm1078_vm3, %v1068_v23, %v600_v8  ;;  %v4879_v8 = vld [vmem:[%s6103_s3 + $0x8] sm:$0xff]  }
  0xec   : > { %v1094_v27 = vsel %vm1078_vm3, %v1071_v26, %v602_v16  ;;  %4455 = vmatprep.subr.bf16.mxu0 %v4879_v8 }
  0xed   : > { %4456 = vmatpush3.bf16.msra.mxu0 %v4879_v8  ;;  %v4895_v8 = vld [vmem:[%s6103_s3 + $0x120] sm:$0xff]  }
  0xee   : > { %v650_v13 = vpop.permute.xlu0 %649 }
  0xef   : > { %v652_v10 = vpop.permute.xlu1 %651  ;;  %v1113_v30 = vsel %vm1099_vm4, %v1092_v28, %v650_v13  ;;  %v1470_v28 = vld [vmem:[#allocation2 + $0x10] sm:$0x1] }
  0xf0   : > { %v1115_v32 = vsel %vm1099_vm4, %v1094_v27, %v652_v10  ;;  %v4881_v27 = vld [vmem:[%s6103_s3 + $0x18] sm:$0xff]  }
  0xf2   : > { %v700_v17 = vpop.permute.xlu0 %699 }
  0xf3   : > { %v702_v18 = vpop.permute.xlu1 %701  ;;  %v1134_v33 = vsel %vm1120_vm5, %v1113_v30, %v700_v17  ;;  %v4880_v17 = vld [vmem:[%s6103_s3 + $0x10] sm:$0xff]  }
  0xf4   : > { %v1136_v53 = vsel %vm1120_vm5, %v1115_v32, %v702_v18  ;;  %4457 = vmatprep.subr.bf16.mxu0 %v4880_v17  ;;  %v1471_v32 = vsel %vm5448_vm14, 0, %v1470_v28 }
  0xf5   : > { %4458 = vmatpush3.bf16.msra.mxu0 %v4880_v17  ;;  %1472 = vst [vmem:[#allocation2 + $0x10] sm:$0x1] %v1471_v32  ;;  %v5591_v17 = vld [vmem:[%s6103_s3 + $0x40] sm:$0xff]  }
  0xf6   : > { %v820_v19 = vpop.permute.xlu0 %819  ;;  %4459 = vmatprep.subr.bf16.mxu0 %v4881_v27 }
  0xf7   : > { %v822_v20 = vpop.permute.xlu1 %821  ;;  %v1155_v37 = vsel %vm1141_vm6, %v1134_v33, %v820_v19 }
  0xf8   : > { %v1157_v46 = vsel %vm1141_vm6, %v1136_v53, %v822_v20  ;;  %v1473_v53 = vld [vmem:[#allocation2 + $0x18] sm:$0x1] }
  0xf9   : > { %v1474_v45 = vsel %vm5448_vm14, 0, %v1473_v53  ;;  %4460 = vmatpush3.bf16.msra.mxu0 %v4881_v27 }
  0xfa   : > { %v870_v21 = vpop.permute.xlu0 %869  ;;  %1475 = vst [vmem:[#allocation2 + $0x18] sm:$0x1] %v1474_v45  ;;  %4461 = vmatprep.subr.bf16.mxu0 %v4882_v50 }
  0xfb   : > { %v872_v29 = vpop.permute.xlu1 %871  ;;  %v1176_v58 = vsel %vm1162_vm7, %v1155_v37, %v870_v21 }
  0xfc   : > { %v1178_v59 = vsel %vm1162_vm7, %v1157_v46, %v872_v29  ;;  %v1502_v29 = vld [vmem:[#allocation2 + $0x14] sm:$0x1] }
  0xfd   : > { %v1503_v33 = vsel %vm5457_vm15, 0, %v1502_v29  ;;  %4462 = vmatpush3.bf16.msra.mxu0 %v4882_v50  ;;  %v1667_v50 = vld [vmem:[#allocation2 + $0xc] sm:$0x1] }
  0xfe   : > { %v920_v35 = vpop.permute.xlu0 %919  ;;  %1504 = vst [vmem:[#allocation2 + $0x14] sm:$0x1] %v1503_v33 }
  0xff   : > { %v922_v38 = vpop.permute.xlu1 %921  ;;  %v1197_v47 = vsel %vm1183_vm8, %v1176_v58, %v920_v35  ;;  %v1505_v58 = vld [vmem:[#allocation2 + $0x1c] sm:$0x1] }
 0x100   : > { %v1199_v61 = vsel %vm1183_vm8, %v1178_v59, %v922_v38  ;;  %v1506_v46 = vsel %vm5457_vm15, 0, %v1505_v58  ;;  %v4883_v59 = vld [vmem:[%s6103_s3 + $0x28] sm:$0xff]  }
 0x101   : > { %1507 = vst [vmem:[#allocation2 + $0x1c] sm:$0x1] %v1506_v46  ;;  %4463 = vmatprep.subr.bf16.mxu0 %v4883_v59 }
 0x102   : > { %v1040_v51 = vpop.permute.xlu0 %1039  ;;  %4464 = vmatpush3.bf16.msra.mxu0 %v4883_v59  ;;  %v1523_v59 = vld [vmem:[#allocation2 + $0x4c] sm:$0x1] }
 0x103   : > { %v1218_v60 = vsel %vm1204_vm9, %v1197_v47, %v1040_v51  ;;  %v1042_v41 = vpop.permute.xlu1 %1041 }
 0x104   : > { %v1220_v44 = vsel %vm1204_vm9, %v1199_v61, %v1042_v41  ;;  %v1730_v61 = vld [vmem:[%s6105_s5] sm:$0x3]  ;;  %v4885_v41 = vld [vmem:[%s6103_s3 + $0x38] sm:$0xff]  }
 0x105   : > { %v4115_v63 = vcombine.low %v1218_v60, %v1220_v44  ;;  %v4884_v60 = vld [vmem:[%s6103_s3 + $0x30] sm:$0xff]   ;;  %4757 = vmatprep.subr.msk.bf16.mxu1 %vm1293_vm1, %v1730_v61  ;;  %v1771_v44 = vsel %vm1293_vm1, %v1730_v61, 0  ;;  %vm2039_vm1 = vsmask.f32 7440 }
 0x106   : > { %v464_v0 = vpop.permute.xlu0 %463  ;;  %4465 = vmatprep.subr.bf16.mxu0 %v4884_v60  ;;  %4444 = vmatpush3.bf16.msra.mxu1 %v1771_v44 }
 0x107   : > { %4436 = vmatmul.mubr.msk.bf16.gmra.mrb[12].mxu0 %vm1277_vm10, %v4115_v63  ;;  %v466_v52 = vpop.permute.xlu1 %465  ;;  %v1074_v18 = vsel %vm1047_vm2, %v5319_v24, %v464_v0  ;;  %v4887_v63 = vld [vmem:[%s5066_s8 + $0x120] ss:$8 sps:$4 sm:$0xff]   ;;  %v4889_v0 = vld [vmem:[%s5066_s8 + $0x130] ss:$8 sps:$4 sm:$0xff]   ;;  %s300_s8 = scalar_lea.vmem %s6107_s7, %s4287_s28 }
 0x108   : > { %4439 = vmatprep.mubr.msk.bf16.mxu0 %vm5000_vm0, %v4995_v36  ;;  %v1662_v36 = vsel %vm5448_vm14, %v1563_v3, %v1661_v5  ;;  %v1077_v21 = vsel %vm1047_vm2, %v5326_v31, %v466_v52  ;;  %4466 = vmatpush3.bf16.msra.mxu0 %v4884_v60  ;;  %v4891_v52 = vld [vmem:[%s6103_s3 + $0x100] sm:$0xff]   ;;  %v1524_v60 = vsel %vm5457_vm15, 0, %v1523_v59  ;;  %vm2038_vm0 = vsmask.f32 3328 }
 0x109   : > { %1663 = vst [vmem:[#allocation2 + $0x4] sm:$0x1] %v1662_v36  ;;  %4467 = vmatprep.subr.bf16.mxu0 %v4885_v41  ;;  %4446 = vmatmul.mubr.msk.bf16.vlgmr.msra.gmra.mrb[0].mxu1 %vm1047_vm2, %v4887_v63  ;;  %v1479_v36 = vld [vmem:[#allocation2 + $0x28] sm:$0x1]  ;;  %1525 = vst [vmem:[#allocation2 + $0x4c] sm:$0x1] %v1524_v60 }
 0x10a   : > { %v604_v34 = vpop.permute.xlu0 %603  ;;  %4449 = vmatprep.mubr.msk.bf16.mxu1 %vm1047_vm2, %v4889_v0  ;;  %4549 = vmatprep.subr.bf16.mxu1 %v4891_v52 }
 0x10b   : > { %v606_v9 = vpop.permute.xlu1 %605  ;;  %v1096_v20 = vsel %vm1078_vm3, %v1074_v18, %v604_v34  ;;  %4550 = vmatpush3.bf16.msra.mxu1 %v4891_v52  ;;  %v1476_v34 = vld [vmem:[#allocation2 + $0x20] sm:$0x1]  ;;  %v1482_v18 = vld [vmem:[#allocation2 + $0x30] sm:$0x1] }
 0x10c   : > { %v1098_v30 = vsel %vm1078_vm3, %v1077_v21, %v606_v9  ;;  %4468 = vmatpush3.bf16.msra.mxu0 %v4885_v41  ;;  %v1477_v5 = vsel %vm5448_vm14, 0, %v1476_v34  ;;  %v1511_v9 = vld [vmem:[#allocation2 + $0x2c] sm:$0x1]  ;;  %4551 = vmatprep.subr.bf16.mxu1 %v4892_v7  ;;  %vm2330_vm3 = vcmask 1042432  }
 0x10d   : > { %1478 = vst [vmem:[#allocation2 + $0x20] sm:$0x1] %v1477_v5  ;;  %4477 = vmatprep.subr.bf16.mxu0 %v5591_v17 }
 0x10e   : > { %v654_v11 = vpop.permute.xlu0 %653 }
 0x10f   : > { %v656_v12 = vpop.permute.xlu1 %655  ;;  %v1117_v23 = vsel %vm1099_vm4, %v1096_v20, %v654_v11  ;;  %v1480_v11 = vsel %vm5448_vm14, 0, %v1479_v36  ;;  %4552 = vmatpush3.bf16.msra.mxu1 %v4892_v7  ;;  %v1483_v20 = vsel %vm5448_vm14, 0, %v1482_v18  ;;  %v1679_v18 = vld [vmem:[#allocation2 + $0x1c] sm:$0x1] }
 0x110   : > { %v1119_v31 = vsel %vm1099_vm4, %v1098_v30, %v656_v12  ;;  %v1512_v12 = vsel %vm5457_vm15, 0, %v1511_v9  ;;  %1481 = vst [vmem:[#allocation2 + $0x28] sm:$0x1] %v1480_v11  ;;  %1484 = vst [vmem:[#allocation2 + $0x30] sm:$0x1] %v1483_v20  ;;  %vm2331_vm4 = vcmask 1046532  }
 0x111   : > { %4450 = vmatmul.mubr.msk.bf16.gmra.mrb[4].mxu1 %vm1047_vm2, %v4890_v2  ;;  %1513 = vst [vmem:[#allocation2 + $0x2c] sm:$0x1] %v1512_v12  ;;  %v5605_v30 = vld [vmem:[%s6102_s2] ss:$0 sm:$0xff]  ;;  %v1715_v62 = vld [vmem:[#allocation2 + $0x4c] sm:$0x1]  ;;  %vm5648_vm2 = vmor %vm2038_vm0, %vm2039_vm1 }
 0x112   : > { %v704_v14 = vpop.permute.xlu0 %703  ;;  %v1716_v63 = vsel %vm5448_vm14, %v1563_v3, %v1715_v62  ;;  %v1670_v12 = vld [vmem:[#allocation2 + $0x10] sm:$0xf]  ;;  %v1673_v3 = vld [vmem:[#allocation2 + $0x14] sm:$0x1]  ;;  %v4903_v62 = vld [vmem:[%s6103_s3 + $0x58] sm:$0xff]  }
 0x113   : > { %v706_v15 = vpop.permute.xlu1 %705  ;;  %v1138_v24 = vsel %vm1120_vm5, %v1117_v23, %v704_v14  ;;  %v4893_v14 = vld [vmem:[%s6103_s3 + $0x110] sm:$0xff]   ;;  %v1485_v23 = vld [vmem:[#allocation2 + $0x38] sm:$0x1]  ;;  %1717 = vst [vmem:[#allocation2 + $0x4c] sm:$0x1] %v1716_v63 }
 0x114   : > { %v1140_v38 = vsel %vm1120_vm5, %v1119_v31, %v706_v15  ;;  %4553 = vmatprep.subr.bf16.mxu1 %v4893_v14  ;;  %v4894_v15 = vld [vmem:[%s6103_s3 + $0x118] sm:$0xff]   ;;  %v1486_v28 = vsel %vm5448_vm14, 0, %v1485_v23  ;;  %vm5662_vm5 = vmor %vm2330_vm3, %vm2331_vm4 }
 0x115   : > { %4554 = vmatpush3.bf16.msra.mxu1 %v4893_v14  ;;  %1487 = vst [vmem:[#allocation2 + $0x38] sm:$0x1] %v1486_v28 }
 0x116   : > { %v824_v16 = vpop.permute.xlu0 %823  ;;  %4555 = vmatprep.subr.bf16.mxu1 %v4894_v15 }
 0x117   : > { %v826_v13 = vpop.permute.xlu1 %825  ;;  %v1159_v35 = vsel %vm1141_vm6, %v1138_v24, %v824_v16  ;;  %v4896_v16 = vld [vmem:[%s6103_s3 + $0x128] sm:$0xff]  }
 0x118   : > { %v1161_v47 = vsel %vm1141_vm6, %v1140_v38, %v826_v13  ;;  %v4897_v13 = vld [vmem:[%s6103_s3 + $0x130] sm:$0xff]  }
 0x119   : > { %4556 = vmatpush3.bf16.msra.mxu1 %v4894_v15 }
 0x11a   : > { %v874_v10 = vpop.permute.xlu0 %873  ;;  %4557 = vmatprep.subr.bf16.mxu1 %v4895_v8 }
 0x11b   : > { %v876_v19 = vpop.permute.xlu1 %875  ;;  %v1180_v43 = vsel %vm1162_vm7, %v1159_v35, %v874_v10  ;;  %v4899_v10 = vld [vmem:[%s6103_s3 + $0x138] sm:$0xff]   ;;  %v1488_v35 = vld [vmem:[#allocation2 + $0x40] sm:$0x1] }
 0x11c   : > { %v1182_v51 = vsel %vm1162_vm7, %v1161_v47, %v876_v19  ;;  %v1514_v19 = vld [vmem:[#allocation2 + $0x34] sm:$0x1]  ;;  %v1489_v53 = vsel %vm5448_vm14, 0, %v1488_v35 }
 0x11d   : > { %4558 = vmatpush3.bf16.msra.mxu1 %v4895_v8  ;;  %v1515_v21 = vsel %vm5457_vm15, 0, %v1514_v19  ;;  %1490 = vst [vmem:[#allocation2 + $0x40] sm:$0x1] %v1489_v53 }
 0x11e   : > { %v924_v26 = vpop.permute.xlu0 %923  ;;  %4559 = vmatprep.subr.bf16.mxu1 %v4896_v16  ;;  %1516 = vst [vmem:[#allocation2 + $0x34] sm:$0x1] %v1515_v21 }
 0x11f   : > { %v926_v37 = vpop.permute.xlu1 %925  ;;  %v1201_v40 = vsel %vm1183_vm8, %v1180_v43, %v924_v26  ;;  %v1517_v26 = vld [vmem:[#allocation2 + $0x3c] sm:$0x1] }
 0x120   : > { %v1203_v39 = vsel %vm1183_vm8, %v1182_v51, %v926_v37  ;;  %v1518_v29 = vsel %vm5457_vm15, 0, %v1517_v26  ;;  %v1520_v37 = vld [vmem:[#allocation2 + $0x44] sm:$0x1] }
 0x121   : > { %4560 = vmatpush3.bf16.msra.mxu1 %v4896_v16  ;;  %1519 = vst [vmem:[#allocation2 + $0x3c] sm:$0x1] %v1518_v29  ;;  %v1521_v58 = vsel %vm5457_vm15, 0, %v1520_v37 }
 0x122   : > { %v1044_v49 = vpop.permute.xlu0 %1043  ;;  %4561 = vmatprep.subr.bf16.mxu1 %v4897_v13  ;;  %1522 = vst [vmem:[#allocation2 + $0x44] sm:$0x1] %v1521_v58 }
 0x123   : > { %v1222_v25 = vsel %vm1204_vm9, %v1201_v40, %v1044_v49  ;;  %v1046_v54 = vpop.permute.xlu1 %1045  ;;  %v5615_v40 = vld [vmem:[%s6103_s3 + $0x140] sm:$0xff]   ;;  %v1664_v49 = vld [vmem:[#allocation2 + $0x8] sm:$0xf] }
 0x124   : > { %v1224_v55 = vsel %vm1204_vm9, %v1203_v39, %v1046_v54 }
 0x125   : > { %v4116_v56 = vcombine.low %v1222_v25, %v1224_v55  ;;  %4562 = vmatpush3.bf16.msra.mxu1 %v4897_v13  ;;  %v1491_v55 = vld [vmem:[#allocation2 + $0x48] sm:$0x1] }
 0x126   : > { %4563 = vmatprep.subr.bf16.mxu1 %v4899_v10 }
 0x127   : > { %4440 = vmatmul.mubr.msk.bf16.gmra.mrb[16].mxu0 %vm1277_vm10, %v4116_v56  ;;  %v1492_v56 = vsel %vm5448_vm14, 0, %v1491_v55 }
 0x128   : > { %1493 = vst [vmem:[#allocation2 + $0x48] sm:$0x1] %v1492_v56 }
 0x129   : > { %4564 = vmatpush3.bf16.msra.mxu1 %v4899_v10  ;;  %v1676_v10 = vld [vmem:[#allocation2 + $0x18] sm:$0xf] }
 0x12a   : > { %4573 = vmatprep.subr.bf16.mxu1 %v5615_v40 }
 0x12f   : > { %v1712_v41 = vld [vmem:[#allocation2 + $0x48] sm:$0xf] }
 0x130   : > { %v1713_v44 = vsel %vm5481_vm12, %v5475_v22, %v1712_v41 }
 0x131   : > { %1714 = vst [vmem:[#allocation2 + $0x48] sm:$0xf] %v1713_v44 }
 0x17a   : > { %v1331_v27 = vpop.f32.mrb[0].mxu0 }
 0x17b   : > { %v4425_v24 = vpop.f32.mrb[1].mxu0 }
 0x17c   : > { %v1334_v32 = vpop.f32.mrb[2].mxu0 }
 0x17d   : > { %v1335_v33 = vadd.f32 %v5605_v30, %v1334_v32  ;;  %v4426_v31 = vpop.f32.mrb[3].mxu0 }
 0x17f   : > { %v1371_v38 = vmax.f32 %v1335_v33, 0.0 }
 0x181   : > { %v4288_v43 = vpack.c.bf16 %v1371_v38, %v1371_v38 }
 0x183   : > { %v1565_v45 = vshrl.u32 %v4288_v43, 16  ;;  %v1568_v47 = vshll.u32 %v4288_v43, 16  ;;  %v4901_v43 = vld [vmem:[%s6103_s3 + $0x48] sm:$0xff]  }
 0x185   : > { %v1567_v46 = vrot.slane %v1565_v45, 7 }
 0x187   : > { %v1570_v51 = vor.u32 %v1568_v47, %v1567_v46  ;;  %v1571_v25 = vrot.slane %v1567_v46, 4 }
 0x189   : > { %v1665_v39 = vsel %vm5481_vm12, %v1570_v51, %v1664_v49  ;;  %v1668_v54 = vsel %vm5448_vm14, %v1571_v25, %v1667_v50  ;;  %v4961_v25 = vld [vmem:[%s6103_s3 + $0x220] sm:$0xff]  }
 0x18a   : > { %1666 = vst [vmem:[#allocation2 + $0x8] sm:$0xf] %v1665_v39  ;;  %1669 = vst [vmem:[#allocation2 + $0xc] sm:$0x1] %v1668_v54  ;;  %v4902_v39 = vld [vmem:[%s6103_s3 + $0x50] sm:$0xff]  }
 0x191   : > { %v4878_v61 = vld [vmem:[#allocation2] ss:$8 sps:$4 sm:$0xff]   ;;  %v2689_v33 = vld [vmem:[#allocation2 + $0xc] sm:$0x1] }
 0x192   : > { %4469 = vmatprep.mubr.bf16.mxu0 %v4878_v61  ;;  %v2688_v13 = vld [vmem:[#allocation2 + $0x8] sm:$0xf]  ;;  %v2714_v45 = vshll.u32 %v2689_v33, 16  ;;  %v2995_v63 = vrot.slane %v2689_v33, 5 }
 0x193   : > { %v2705_v26 = vshrl.u32 %v2688_v13, 16  ;;  %v2708_v28 = vshll.u32 %v2688_v13, 16  ;;  %v2969_v59 = vld [vmem:[#allocation2 + $0x8] sm:$0xe] }
 0x194   : > { %v2716_v54 = vrot.slane %v2714_v45, 5  ;;  %v4221_v44 = vrot.slane %v2969_v59, 9  ;;  %v2022_v59 = vld [vmem:[#allocation2] sm:$0xf] }
 0x195   : > { %v2707_v24 = vrot.slane %v2705_v26, 4  ;;  %v2710_v32 = vrot.slane %v2708_v28, 5 }
 0x197   : > { %v2711_v37 = vor.u32 %v2710_v32, %v2707_v24  ;;  %v1691_v24 = vld [vmem:[#allocation2 + $0x2c] sm:$0x1] }
 0x199   : > { %v2712_v50 = vrot.slane %v2711_v37, 4 }
 0x19a   : > { %v1339_v0 = vpop.f32.mrb[4].mxu0 }
 0x19b   : > { %v1340_v48 = vadd.f32 %v5605_v30, %v1339_v0  ;;  %v4429_v2 = vpop.f32.mrb[5].mxu0  ;;  %v2717_v60 = vsel %vm5648_vm2, %v2712_v50, %v2716_v54 }
 0x19c   : > { %v1342_v52 = vpop.f32.mrb[6].mxu0 }
 0x19d   : > { %v1372_v34 = vmax.f32 %v1340_v48, 0.0  ;;  %v1343_v4 = vadd.f32 %v5605_v30, %v1342_v52  ;;  %v4430_v5 = vpop.f32.mrb[7].mxu0 }
 0x19f   : > { %v4289_v6 = vpack.c.bf16 %v1372_v34, %v1372_v34  ;;  %v1373_v7 = vmax.f32 %v1343_v4, 0.0 }
 0x1a1   : > { %v1573_v36 = vshrl.u32 %v4289_v6, 16  ;;  %v4290_v22 = vpack.c.bf16 %v1373_v7, %v1373_v7  ;;  %v1576_v1 = vshll.u32 %v4289_v6, 16 }
 0x1a3   : > { %v1575_v9 = vrot.slane %v1573_v36, 7  ;;  %v1581_v11 = vshrl.u32 %v4290_v22, 16  ;;  %v1584_v16 = vshll.u32 %v4290_v22, 16  ;;  %v4904_v22 = vld [vmem:[%s6103_s3 + $0x60] sm:$0xff]  }
 0x1a5   : > { %v1578_v14 = vor.u32 %v1576_v1, %v1575_v9  ;;  %v1579_v15 = vrot.slane %v1575_v9, 4  ;;  %v1583_v8 = vrot.slane %v1581_v11, 7  ;;  %v5673_v9 = vsel %vm5662_vm5, %v4221_v44, %v2995_v63 }
 0x1a6   : > { %v2042_v63 = vshrl.u32 %v2022_v59, 16 }
 0x1a7   : > { %v1671_v19 = vsel %vm5481_vm12, %v1578_v14, %v1670_v12  ;;  %v1674_v20 = vsel %vm5448_vm14, %v1579_v15, %v1673_v3  ;;  %v1586_v21 = vor.u32 %v1584_v16, %v1583_v8  ;;  %v1587_v23 = vrot.slane %v1583_v8, 4  ;;  %v4905_v8 = vld [vmem:[%s6103_s3 + $0x68] sm:$0xff]  }
 0x1a8   : > { %1672 = vst [vmem:[#allocation2 + $0x10] sm:$0xf] %v1671_v19  ;;  %1675 = vst [vmem:[#allocation2 + $0x14] sm:$0x1] %v1674_v20  ;;  %v1685_v19 = vld [vmem:[#allocation2 + $0x24] sm:$0x1] }
 0x1a9   : > { %v1677_v29 = vsel %vm5481_vm12, %v1586_v21, %v1676_v10  ;;  %v1680_v27 = vsel %vm5448_vm14, %v1587_v23, %v1679_v18  ;;  %v1682_v18 = vld [vmem:[#allocation2 + $0x20] sm:$0xf] }
 0x1aa   : > { %1678 = vst [vmem:[#allocation2 + $0x18] sm:$0xf] %v1677_v29  ;;  %1681 = vst [vmem:[#allocation2 + $0x1c] sm:$0x1] %v1680_v27  ;;  %v4906_v29 = vld [vmem:[%s6103_s3 + $0x70] sm:$0xff]  }
 0x1ab   : > { %v1688_v27 = vld [vmem:[#allocation2 + $0x28] sm:$0xf] }
 0x1af   : > { %v2690_v31 = vld [vmem:[#allocation2 + $0x10] sm:$0xf]  ;;  %v2691_v35 = vld [vmem:[#allocation2 + $0x14] sm:$0x1] }
 0x1b0   : > { %v2719_v53 = vshrl.u32 %v2690_v31, 16  ;;  %v2722_v58 = vshll.u32 %v2690_v31, 16  ;;  %v2728_v49 = vshll.u32 %v2691_v35, 16  ;;  %v2970_v61 = vld [vmem:[#allocation2 + $0x10] sm:$0xe]  ;;  %v2999_v0 = vrot.slane %v2691_v35, 5 }
 0x1b1   : > { %v4888_v38 = vld [vmem:[#allocation2 + $0x10] ss:$8 sps:$4 sm:$0xff]   ;;  %v4222_v4 = vrot.slane %v2970_v61, 9 }
 0x1b2   : > { %v2721_v46 = vrot.slane %v2719_v53, 4  ;;  %v2724_v47 = vrot.slane %v2722_v58, 5  ;;  %4470 = vmatmul.mubr.bf16.vlgmr.msra.gmra.mrb[20].mxu0 %v4888_v38  ;;  %v2730_v56 = vrot.slane %v2728_v49, 5  ;;  %v2692_v28 = vld [vmem:[#allocation2 + $0x18] sm:$0xf] }
 0x1b3   : > { %4478 = vmatpush3.bf16.msra.mxu0 %v5591_v17  ;;  %v5677_v1 = vsel %vm5662_vm5, %v4222_v4, %v2999_v0  ;;  %v2733_v37 = vshrl.u32 %v2692_v28, 16  ;;  %v2736_v53 = vshll.u32 %v2692_v28, 16  ;;  %v2693_v49 = vld [vmem:[#allocation2 + $0x1c] sm:$0x1]  ;;  %v2045_v0 = vshll.u32 %v2022_v59, 16 }
 0x1b4   : > { %v2725_v51 = vor.u32 %v2724_v47, %v2721_v46  ;;  %4479 = vmatprep.subr.bf16.mxu0 %v4901_v43  ;;  %v4229_v11 = vcombine.low %v5673_v9, %v5677_v1  ;;  %v5701_v47 = vld [vmem:[%s6103_s3 + $0x80] sm:$0xff]   ;;  %v2971_v4 = vld [vmem:[#allocation2 + $0x18] sm:$0xe]  ;;  %v1697_v59 = vld [vmem:[#allocation2 + $0x34] sm:$0x1] }
 0x1b5   : > { %v2735_v45 = vrot.slane %v2733_v37, 4  ;;  %v2738_v46 = vrot.slane %v2736_v53, 5  ;;  %v5727_v53 = vld [vmem:[#allocation2 + $0x4] sm:$0x1] }
 0x1b6   : > { %v2726_v55 = vrot.slane %v2725_v51, 4 }
 0x1b7   : > { %4480 = vmatpush3.bf16.msra.mxu0 %v4901_v43  ;;  %v4908_v43 = vld [vmem:[%s6103_s3 + $0x78] sm:$0xff]  }
 0x1b8   : > { %v2731_v17 = vsel %vm5648_vm2, %v2726_v55, %v2730_v56  ;;  %4481 = vmatprep.subr.bf16.mxu0 %v4902_v39 }
 0x1b9   : > { %v4209_v41 = vcombine.low %v2717_v60, %v2731_v17  ;;  %v2742_v60 = vshll.u32 %v2693_v49, 16 }
 0x1ba   : > { %v1347_v48 = vpop.f32.mrb[8].mxu0 }
 0x1bb   : > { %v1348_v52 = vadd.f32 %v5605_v30, %v1347_v48  ;;  %v4433_v34 = vpop.f32.mrb[9].mxu0  ;;  %4565 = vmatprep.mubr.bf16.mxu1 %v4209_v41  ;;  %4482 = vmatpush3.bf16.msra.mxu0 %v4902_v39  ;;  %v2739_v39 = vor.u32 %v2738_v46, %v2735_v45  ;;  %v2744_v48 = vrot.slane %v2742_v60, 5 }
 0x1bc   : > { %v1350_v5 = vpop.f32.mrb[10].mxu0  ;;  %4483 = vmatprep.subr.bf16.mxu0 %v4903_v62 }
 0x1bd   : > { %v1374_v6 = vmax.f32 %v1348_v52, 0.0  ;;  %v1351_v7 = vadd.f32 %v5605_v30, %v1350_v5  ;;  %v4434_v36 = vpop.f32.mrb[11].mxu0 }
 0x1be   : > { %v2047_v36 = vrot.slane %v2045_v0, 5  ;;  %v1700_v0 = vld [vmem:[#allocation2 + $0x38] sm:$0xf] }
 0x1bf   : > { %v4291_v12 = vpack.c.bf16 %v1374_v6, %v1374_v6  ;;  %v1375_v3 = vmax.f32 %v1351_v7, 0.0  ;;  %4484 = vmatpush3.bf16.msra.mxu0 %v4903_v62  ;;  %v2740_v62 = vrot.slane %v2739_v39, 4  ;;  %v2044_v7 = vrot.slane %v2042_v63, 4 }
 0x1c0   : > { %4485 = vmatprep.subr.bf16.mxu0 %v4904_v22 }
 0x1c1   : > { %v1589_v14 = vshrl.u32 %v4291_v12, 16  ;;  %v4292_v15 = vpack.c.bf16 %v1375_v3, %v1375_v3  ;;  %v1592_v13 = vshll.u32 %v4291_v12, 16  ;;  %v2745_v5 = vsel %vm5648_vm2, %v2740_v62, %v2744_v48  ;;  %v2024_v3 = vld [vmem:[#allocation2 + $0x8] sm:$0xf]  ;;  %v1703_v48 = vld [vmem:[#allocation2 + $0x3c] sm:$0x1] }
 0x1c3   : > { %v1591_v16 = vrot.slane %v1589_v14, 7  ;;  %v1597_v10 = vshrl.u32 %v4292_v15, 16  ;;  %4486 = vmatpush3.bf16.msra.mxu0 %v4904_v22  ;;  %v1600_v26 = vshll.u32 %v4292_v15, 16  ;;  %v4913_v14 = vld [vmem:[%s6103_s3 + $0x148] sm:$0xff]   ;;  %v4223_v15 = vrot.slane %v2971_v4, 9 }
 0x1c4   : > { %4487 = vmatprep.subr.bf16.mxu0 %v4905_v8  ;;  %v5740_v4 = vld [vmem:[#allocation2 + $0x1c] sm:$0x1] }
 0x1c5   : > { %v1594_v20 = vor.u32 %v1592_v13, %v1591_v16  ;;  %v1595_v21 = vrot.slane %v1591_v16, 4  ;;  %v1599_v23 = vrot.slane %v1597_v10, 7 }
 0x1c7   : > { %v1683_v32 = vsel %vm5481_vm12, %v1594_v20, %v1682_v18  ;;  %v1686_v33 = vsel %vm5448_vm14, %v1595_v21, %v1685_v19  ;;  %v1602_v31 = vor.u32 %v1600_v26, %v1599_v23  ;;  %v1603_v35 = vrot.slane %v1599_v23, 4  ;;  %4488 = vmatpush3.bf16.msra.mxu0 %v4905_v8 }
 0x1c8   : > { %1684 = vst [vmem:[#allocation2 + $0x20] sm:$0xf] %v1683_v32  ;;  %1687 = vst [vmem:[#allocation2 + $0x24] sm:$0x1] %v1686_v33  ;;  %4489 = vmatprep.subr.bf16.mxu0 %v4906_v29  ;;  %v3003_v8 = vrot.slane %v2693_v49, 5  ;;  %v2048_v21 = vor.u32 %v2047_v36, %v2044_v7  ;;  %v2056_v23 = vshrl.u32 %v2024_v3, 16 }
 0x1c9   : > { %v1689_v58 = vsel %vm5481_vm12, %v1602_v31, %v1688_v27  ;;  %v1692_v38 = vsel %vm5448_vm14, %v1603_v35, %v1691_v24  ;;  %v2059_v26 = vshll.u32 %v2024_v3, 16  ;;  %v2026_v24 = vld [vmem:[#allocation2 + $0x10] sm:$0xf] }
 0x1ca   : > { %1690 = vst [vmem:[#allocation2 + $0x28] sm:$0xf] %v1689_v58  ;;  %1693 = vst [vmem:[#allocation2 + $0x2c] sm:$0x1] %v1692_v38  ;;  %v4915_v32 = vld [vmem:[%s6103_s3 + $0x150] sm:$0xff]   ;;  %v5719_v33 = vsel %vm5662_vm5, %v4223_v15, %v3003_v8  ;;  %v2070_v46 = vshrl.u32 %v2026_v24, 16 }
 0x1cb   : > { %4490 = vmatpush3.bf16.msra.mxu0 %v4906_v29  ;;  %v2028_v58 = vld [vmem:[#allocation2 + $0x18] sm:$0xf]  ;;  %v5729_v38 = vld [vmem:[#allocation2 + $0xc] sm:$0x1]  ;;  %v2061_v45 = vrot.slane %v2059_v26, 5  ;;  %v2073_v49 = vshll.u32 %v2026_v24, 16 }
 0x1cc   : > { %4491 = vmatprep.subr.bf16.mxu0 %v4908_v43  ;;  %v5731_v39 = vrot.slane %v2048_v21, 4  ;;  %v2084_v60 = vshrl.u32 %v2028_v58, 16 }
 0x1ce   : > { %v2086_v15 = vrot.slane %v2084_v60, 4 }
 0x1cf   : > { %v2694_v50 = vld [vmem:[#allocation2 + $0x20] sm:$0xf]  ;;  %v2695_v51 = vld [vmem:[#allocation2 + $0x24] sm:$0x1]  ;;  %4492 = vmatpush3.bf16.msra.mxu0 %v4908_v43  ;;  %v2058_v43 = vrot.slane %v2056_v23, 4 }
 0x1d0   : > { %v2747_v54 = vshrl.u32 %v2694_v50, 16  ;;  %v2750_v55 = vshll.u32 %v2694_v50, 16  ;;  %4501 = vmatprep.subr.bf16.mxu0 %v5701_v47  ;;  %v2756_v41 = vshll.u32 %v2695_v51, 16  ;;  %v2972_v22 = vld [vmem:[#allocation2 + $0x20] sm:$0xe]  ;;  %v3007_v16 = vrot.slane %v2695_v51, 5 }
 0x1d1   : > { %v4898_v56 = vld [vmem:[#allocation2 + $0x20] ss:$8 sps:$4 sm:$0xff]   ;;  %v4224_v19 = vrot.slane %v2972_v22, 9 }
 0x1d2   : > { %v2749_v17 = vrot.slane %v2747_v54, 4  ;;  %v2752_v61 = vrot.slane %v2750_v55, 5  ;;  %4473 = vmatprep.mubr.bf16.mxu0 %v4898_v56  ;;  %v2758_v34 = vrot.slane %v2756_v41, 5  ;;  %v2051_v54 = vshll.u32 %v5727_v53, 16  ;;  %v4917_v55 = vld [vmem:[%s6103_s3 + $0x158] sm:$0xff]  }
 0x1d3   : > { %v5723_v31 = vsel %vm5662_vm5, %v4224_v19, %v3007_v16  ;;  %v1694_v56 = vld [vmem:[#allocation2 + $0x30] sm:$0xf]  ;;  %v2032_v63 = vld [vmem:[#allocation2 + $0x28] sm:$0xf]  ;;  %v2030_v16 = vld [vmem:[#allocation2 + $0x20] sm:$0xf] }
 0x1d4   : > { %v2753_v44 = vor.u32 %v2752_v61, %v2749_v17  ;;  %v2087_v17 = vshll.u32 %v2028_v58, 16  ;;  %v2696_v3 = vld [vmem:[#allocation2 + $0x28] sm:$0xf] }
 0x1d5   : > { %v2761_v23 = vshrl.u32 %v2696_v3, 16  ;;  %v2764_v26 = vshll.u32 %v2696_v3, 16  ;;  %v4921_v58 = vld [vmem:[%s6103_s3 + $0x168] sm:$0xff]  }
 0x1d6   : > { %v2754_v52 = vrot.slane %v2753_v44, 4  ;;  %v2065_v44 = vshll.u32 %v5729_v38, 16  ;;  %v2089_v8 = vrot.slane %v2087_v17, 5  ;;  %v4923_v17 = vld [vmem:[%s6103_s3 + $0x170] sm:$0xff]  }
 0x1d8   : > { %v2759_v6 = vsel %vm5648_vm2, %v2754_v52, %v2758_v34  ;;  %v2062_v52 = vor.u32 %v2061_v45, %v2058_v43  ;;  %v5738_v34 = vld [vmem:[#allocation2 + $0x14] sm:$0x1]  ;;  %v2053_v43 = vrot.slane %v2051_v54, 5  ;;  %v5768_v54 = vld [vmem:[#allocation2 + $0x2c] sm:$0x1] }
 0x1d9   : > { %v4210_v12 = vcombine.low %v2745_v5, %v2759_v6  ;;  %v2072_v5 = vrot.slane %v2070_v46, 4  ;;  %v2075_v6 = vrot.slane %v2073_v49, 5  ;;  %v2090_v49 = vor.u32 %v2089_v8, %v2086_v15 }
 0x1da   : > { %v1355_v13 = vpop.f32.mrb[12].mxu0  ;;  %v2063_v45 = vrot.slane %v2062_v52, 4  ;;  %v2121_v15 = vshll.u32 %v5768_v54, 16 }
 0x1db   : > { %v1356_v10 = vadd.f32 %v5605_v30, %v1355_v13  ;;  %v4437_v18 = vpop.f32.mrb[13].mxu0  ;;  %4566 = vmatmul.mubr.bf16.vlgmr.msra.gmra.mrb[8].mxu1 %v4210_v12  ;;  %v2112_v13 = vshrl.u32 %v2032_v63, 16  ;;  %v2076_v46 = vor.u32 %v2075_v6, %v2072_v5  ;;  %v2091_v5 = vrot.slane %v2090_v49, 4  ;;  %v5777_v6 = vld [vmem:[#allocation2 + $0x24] sm:$0x1] }
 0x1dc   : > { %v1358_v20 = vpop.f32.mrb[14].mxu0  ;;  %4574 = vmatpush3.bf16.msra.mxu1 %v5615_v40  ;;  %v4230_v40 = vcombine.low %v5719_v33, %v5723_v31 }
 0x1dd   : > { %v1376_v28 = vmax.f32 %v1356_v10, 0.0  ;;  %v1359_v29 = vadd.f32 %v5605_v30, %v1358_v20  ;;  %v4438_v27 = vpop.f32.mrb[15].mxu0  ;;  %4575 = vmatprep.subr.bf16.mxu1 %v4913_v14  ;;  %v2115_v10 = vshll.u32 %v2032_v63, 16  ;;  %v2077_v52 = vrot.slane %v2076_v46, 4  ;;  %v5791_v46 = vld [vmem:[%s6103_s3 + $0x180] sm:$0xff]  }
 0x1df   : > { %v4293_v35 = vpack.c.bf16 %v1376_v28, %v1376_v28  ;;  %v1377_v37 = vmax.f32 %v1359_v29, 0.0  ;;  %v2079_v28 = vshll.u32 %v5738_v34, 16  ;;  %v2093_v29 = vshll.u32 %v5740_v4, 16 }
 0x1e0   : > { %4576 = vmatpush3.bf16.msra.mxu1 %v4913_v14  ;;  %v4919_v14 = vld [vmem:[%s6103_s3 + $0x160] sm:$0xff]  }
 0x1e1   : > { %v1605_v50 = vshrl.u32 %v4293_v35, 16  ;;  %v4294_v51 = vpack.c.bf16 %v1377_v37, %v1377_v37  ;;  %4577 = vmatprep.subr.bf16.mxu1 %v4915_v32  ;;  %v1608_v41 = vshll.u32 %v4293_v35, 16  ;;  %v2101_v35 = vshll.u32 %v2030_v16, 16  ;;  %v5755_v37 = vld [vmem:[#allocation2] sm:$0xe] }
 0x1e2   : > { %v4177_v60 = vrot.slane %v5755_v37, 9 }
 0x1e3   : > { %v1607_v61 = vrot.slane %v1605_v50, 7  ;;  %v1613_v62 = vshrl.u32 %v4294_v51, 16  ;;  %v1616_v12 = vshll.u32 %v4294_v51, 16  ;;  %v2114_v50 = vrot.slane %v2112_v13, 4 }
 0x1e4   : > { %4578 = vmatpush3.bf16.msra.mxu1 %v4915_v32  ;;  %v2098_v32 = vshrl.u32 %v2030_v16, 16  ;;  %v2117_v51 = vrot.slane %v2115_v10, 5  ;;  %v2103_v63 = vrot.slane %v2101_v35, 5 }
 0x1e5   : > { %v1610_v7 = vor.u32 %v1608_v41, %v1607_v61  ;;  %v1611_v36 = vrot.slane %v1607_v61, 4  ;;  %v1615_v22 = vrot.slane %v1613_v62, 7  ;;  %4579 = vmatprep.subr.bf16.mxu1 %v4917_v55  ;;  %v5764_v61 = vrot.slane %v2079_v28, 5 }
 0x1e6   : > { %v5766_v41 = vrot.slane %v2093_v29, 5  ;;  %v2100_v62 = vrot.slane %v2098_v32, 4 }
 0x1e7   : > { %v1695_v18 = vsel %vm5481_vm12, %v1610_v7, %v1694_v56  ;;  %v1698_v19 = vsel %vm5448_vm14, %v1611_v36, %v1697_v59  ;;  %v1618_v20 = vor.u32 %v1616_v12, %v1615_v22  ;;  %v1619_v21 = vrot.slane %v1615_v22, 4 }
 0x1e8   : > { %1696 = vst [vmem:[#allocation2 + $0x30] sm:$0xf] %v1695_v18  ;;  %1699 = vst [vmem:[#allocation2 + $0x34] sm:$0x1] %v1698_v19  ;;  %4580 = vmatpush3.bf16.msra.mxu1 %v4917_v55  ;;  %v2067_v55 = vrot.slane %v2065_v44, 5  ;;  %v2763_v56 = vrot.slane %v2761_v23, 4  ;;  %v2054_v44 = vsel %vm5648_vm2, %v5731_v39, %v2053_v43  ;;  %v2118_v22 = vor.u32 %v2117_v51, %v2114_v50 }
 0x1e9   : > { %v1701_v27 = vsel %vm5481_vm12, %v1618_v20, %v1700_v0  ;;  %v1704_v24 = vsel %vm5448_vm14, %v1619_v21, %v1703_v48  ;;  %4581 = vmatprep.subr.bf16.mxu1 %v4919_v14  ;;  %v2766_v59 = vrot.slane %v2764_v26, 5  ;;  %v5775_v48 = vld [vmem:[#allocation2 + $0x2c] sm:$0x1]  ;;  %v4925_v39 = vld [vmem:[%s6103_s3 + $0x178] sm:$0xff]   ;;  %v2104_v18 = vor.u32 %v2103_v63, %v2100_v62 }
 0x1ea   : > { %1702 = vst [vmem:[#allocation2 + $0x38] sm:$0xf] %v1701_v27  ;;  %1705 = vst [vmem:[#allocation2 + $0x3c] sm:$0x1] %v1704_v24  ;;  %v2068_v0 = vsel %vm5648_vm2, %v2063_v45, %v2067_v55  ;;  %v2770_v10 = vshll.u32 %v5775_v48, 16  ;;  %v2107_v19 = vshll.u32 %v5777_v6, 16 }
 0x1eb   : > { %v2767_v12 = vor.u32 %v2766_v59, %v2763_v56  ;;  %v4165_v13 = vcombine.low %v2054_v44, %v2068_v0  ;;  %v2119_v29 = vrot.slane %v2118_v22, 4  ;;  %v2123_v43 = vrot.slane %v2121_v15, 5 }
 0x1ec   : > { %4582 = vmatpush3.bf16.msra.mxu1 %v4919_v14  ;;  %v2105_v49 = vrot.slane %v2104_v18, 4  ;;  %v2772_v59 = vrot.slane %v2770_v10, 5  ;;  %v2096_v44 = vsel %vm5648_vm2, %v2091_v5, %v5766_v41  ;;  %v2109_v0 = vrot.slane %v2107_v19, 5  ;;  %v2307_v5 = vld [vmem:[#allocation2 + $0x8] sm:$0xe] }
 0x1ed   : > { %4583 = vmatprep.subr.bf16.mxu1 %v4921_v58  ;;  %v2768_v35 = vrot.slane %v2767_v12, 4 }
 0x1ef   : > { %v2698_v7 = vld [vmem:[#allocation2 + $0x30] sm:$0xf]  ;;  %v5779_v36 = vld [vmem:[#allocation2 + $0x34] sm:$0x1] }
 0x1f0   : > { %v2775_v3 = vshrl.u32 %v2698_v7, 16  ;;  %v2778_v14 = vshll.u32 %v2698_v7, 16  ;;  %v2034_v8 = vld [vmem:[#allocation2 + $0x30] sm:$0xf]  ;;  %4584 = vmatpush3.bf16.msra.mxu1 %v4921_v58  ;;  %v2784_v23 = vshll.u32 %v5779_v36, 16  ;;  %v2124_v7 = vsel %vm5648_vm2, %v2119_v29, %v2123_v43 }
 0x1f1   : > { %v4907_v16 = vld [vmem:[#allocation2 + $0x30] ss:$8 sps:$4 sm:$0xff]   ;;  %4585 = vmatprep.subr.bf16.mxu1 %v4923_v17  ;;  %v2126_v28 = vshrl.u32 %v2034_v8, 16  ;;  %v2129_v27 = vshll.u32 %v2034_v8, 16  ;;  %v5793_v50 = vld [vmem:[#allocation2 + $0x3c] sm:$0x1] }
 0x1f2   : > { %v2777_v20 = vrot.slane %v2775_v3, 4  ;;  %v2780_v21 = vrot.slane %v2778_v14, 5  ;;  %v2036_v26 = vld [vmem:[#allocation2 + $0x38] sm:$0xf]  ;;  %4474 = vmatmul.mubr.bf16.gmra.mrb[24].mxu0 %v4907_v16  ;;  %v2786_v63 = vrot.slane %v2784_v23, 5  ;;  %v2773_v3 = vsel %vm5648_vm2, %v2768_v35, %v2772_v59  ;;  %v4910_v16 = vld [vmem:[%s6103_s3 + $0x88] sm:$0xff]  }
 0x1f3   : > { %v2140_v24 = vshrl.u32 %v2036_v26, 16  ;;  %v2143_v32 = vshll.u32 %v2036_v26, 16  ;;  %4493 = vmatprep.mubr.bf16.mxu0 %v4165_v13  ;;  %v2128_v45 = vrot.slane %v2126_v28, 4  ;;  %v2131_v51 = vrot.slane %v2129_v27, 5  ;;  %v5803_v22 = vld [vmem:[#allocation2 + $0x34] sm:$0x1] }
 0x1f4   : > { %v2781_v58 = vor.u32 %v2780_v21, %v2777_v20  ;;  %4586 = vmatpush3.bf16.msra.mxu1 %v4923_v17  ;;  %v2082_v17 = vsel %vm5648_vm2, %v2077_v52, %v5764_v61  ;;  %v2149_v41 = vshll.u32 %v5793_v50, 16  ;;  %v2110_v52 = vsel %vm5648_vm2, %v2105_v49, %v2109_v0  ;;  %v1706_v59 = vld [vmem:[#allocation2 + $0x40] sm:$0xf] }
 0x1f5   : > { %v2142_v55 = vrot.slane %v2140_v24, 4  ;;  %v2145_v56 = vrot.slane %v2143_v32, 5  ;;  %4587 = vmatprep.subr.bf16.mxu1 %v4925_v39  ;;  %v2132_v15 = vor.u32 %v2131_v51, %v2128_v45  ;;  %v4166_v61 = vcombine.low %v2082_v17, %v2096_v44  ;;  %v4912_v32 = vld [vmem:[%s6103_s3 + $0x90] sm:$0xff]   ;;  %v4914_v51 = vld [vmem:[%s6103_s3 + $0x98] sm:$0xff]   ;;  %v4916_v44 = vld [vmem:[%s6103_s3 + $0xa0] sm:$0xff]  }
 0x1f6   : > { %v2782_v62 = vrot.slane %v2781_v58, 4  ;;  %v2335_v13 = vrot.slane %v5727_v53, 5  ;;  %v4167_v18 = vcombine.low %v2110_v52, %v2124_v7  ;;  %v2135_v19 = vshll.u32 %v5803_v22, 16  ;;  %v2700_v17 = vld [vmem:[#allocation2 + $0x38] sm:$0xf] }
 0x1f7   : > { %v2146_v12 = vor.u32 %v2145_v56, %v2142_v55  ;;  %v4178_v26 = vrot.slane %v2307_v5, 9  ;;  %v2133_v53 = vrot.slane %v2132_v15, 4  ;;  %v2151_v29 = vrot.slane %v2149_v41, 5  ;;  %v2309_v15 = vld [vmem:[#allocation2 + $0x18] sm:$0xe]  ;;  %v5847_v41 = vpop.f32.mrb[0].mxu1 }
 0x1f8   : > { %v2787_v14 = vsel %vm5648_vm2, %v2782_v62, %v2786_v63  ;;  %4588 = vmatpush3.bf16.msra.mxu1 %v4925_v39  ;;  %v2339_v39 = vrot.slane %v5729_v38, 5  ;;  %v2137_v38 = vrot.slane %v2135_v19, 5  ;;  %v4180_v52 = vrot.slane %v2309_v15, 9  ;;  %v2974_v15 = vld [vmem:[#allocation2 + $0x30] sm:$0xe] }
 0x1f9   : > { %v4211_v8 = vcombine.low %v2773_v3, %v2787_v14  ;;  %4597 = vmatprep.subr.bf16.mxu1 %v5791_v46  ;;  %v2147_v20 = vrot.slane %v2146_v12, 4  ;;  %v2789_v12 = vshrl.u32 %v2700_v17, 16  ;;  %v2792_v3 = vshll.u32 %v2700_v17, 16  ;;  %v4918_v14 = vld [vmem:[%s6103_s3 + $0xa8] sm:$0xff]  }
 0x1fa   : > { %v1363_v10 = vpop.f32.mrb[16].mxu0  ;;  %4494 = vmatmul.mubr.bf16.vlgmr.msra.gmra.mrb[20].mxu0 %v4166_v61  ;;  %v2340_v58 = vsel %vm5662_vm5, %v4178_v26, %v2339_v39  ;;  %v2138_v43 = vsel %vm5648_vm2, %v2133_v53, %v2137_v38  ;;  %v2311_v26 = vld [vmem:[#allocation2 + $0x28] sm:$0xe]  ;;  %v2310_v53 = vld [vmem:[#allocation2 + $0x20] sm:$0xe] }
 0x1fb   : > { %v1364_v21 = vadd.f32 %v5605_v30, %v1363_v10  ;;  %v4441_v23 = vpop.f32.mrb[17].mxu0  ;;  %4569 = vmatprep.mubr.bf16.mxu1 %v4211_v8  ;;  %4502 = vmatpush3.bf16.msra.mxu0 %v5701_v47  ;;  %v2152_v30 = vsel %vm5648_vm2, %v2147_v20, %v2151_v29  ;;  %v2336_v47 = vsel %vm5662_vm5, %v4177_v60, %v2335_v13  ;;  %v1709_v60 = vld [vmem:[#allocation2 + $0x44] sm:$0x1]  ;;  %v2791_v5 = vrot.slane %v2789_v12, 4  ;;  %v5849_v8 = vpop.f32.mrb[1].mxu1  ;;  %v4922_v13 = vld [vmem:[%s6103_s3 + $0xb8] sm:$0xff]  }
 0x1fc   : > { %v1366_v28 = vpop.f32.mrb[18].mxu0  ;;  %4497 = vmatprep.mubr.bf16.mxu0 %v4167_v18  ;;  %4503 = vmatprep.subr.bf16.mxu0 %v4910_v16  ;;  %v4168_v49 = vcombine.low %v2138_v43, %v2152_v30  ;;  %v4185_v55 = vcombine.low %v2336_v47, %v2340_v58  ;;  %v2794_v57 = vrot.slane %v2792_v3, 5  ;;  %v5854_v61 = vpop.f32.mrb[2].mxu1  ;;  %v2308_v10 = vld [vmem:[#allocation2 + $0x10] sm:$0xe]  ;;  %v2355_v47 = vrot.slane %v5768_v54, 5 }
 0x1fd   : > { %v1378_v27 = vmax.f32 %v1364_v21, 0.0  ;;  %v4442_v24 = vpop.f32.mrb[19].mxu0  ;;  %v5861_v18 = vld [vmem:[#allocation2 + $0x3c] sm:$0x1]  ;;  %v2347_v28 = vrot.slane %v5740_v4, 5  ;;  %v4179_v58 = vrot.slane %v2308_v10, 9 }
 0x1fe   : > { %v2795_v39 = vor.u32 %v2794_v57, %v2791_v5  ;;  %v2343_v43 = vrot.slane %v5738_v34, 5  ;;  %v4926_v3 = vld [vmem:[%s6103_s3 + $0xc8] sm:$0xff]   ;;  %v2359_v10 = vrot.slane %v5803_v22, 5 }
 0x1ff   : > { %v4295_v35 = vpack.c.bf16 %v1378_v27, %v1378_v27  ;;  %4504 = vmatpush3.bf16.msra.mxu0 %v4910_v16  ;;  %v5856_v16 = vpop.f32.mrb[3].mxu1  ;;  %v2798_v27 = vshll.u32 %v5861_v18, 16  ;;  %v2348_v54 = vsel %vm5662_vm5, %v4180_v52, %v2347_v28  ;;  %v2973_v52 = vld [vmem:[#allocation2 + $0x28] sm:$0xe] }
 0x200   : > { %4505 = vmatprep.subr.bf16.mxu0 %v4912_v32  ;;  %v5866_v29 = vpop.f32.mrb[4].mxu1 }
 0x201   : > { %v1621_v45 = vshrl.u32 %v4295_v35, 16  ;;  %v1624_v37 = vshll.u32 %v4295_v35, 16  ;;  %v5870_v30 = vpop.f32.mrb[5].mxu1  ;;  %v4182_v35 = vrot.slane %v2311_v26, 9  ;;  %v3011_v26 = vrot.slane %v5775_v48, 5  ;;  %v4931_v48 = vld [vmem:[%s6103_s3 + $0xd8] sm:$0xff]  }
 0x202   : > { %4498 = vmatmul.mubr.bf16.gmra.mrb[24].mxu0 %v4168_v49  ;;  %v5874_v49 = vpop.f32.mrb[6].mxu1 }
 0x203   : > { %v1623_v56 = vrot.slane %v1621_v45, 7  ;;  %4506 = vmatpush3.bf16.msra.mxu0 %v4912_v32  ;;  %4517 = vmatprep.mubr.bf16.mxu0 %v4185_v55  ;;  %v2796_v45 = vrot.slane %v2795_v39, 4  ;;  %v4181_v55 = vrot.slane %v2310_v53, 9  ;;  %v3015_v39 = vrot.slane %v5779_v36, 5  ;;  %v4930_v53 = vld [vmem:[%s6103_s3 + $0x188] sm:$0xff]  }
 0x204   : > { %4507 = vmatprep.subr.bf16.mxu0 %v4914_v51 }
 0x205   : > { %v1626_v62 = vor.u32 %v1624_v37, %v1623_v56  ;;  %v1627_v63 = vrot.slane %v1623_v56, 4  ;;  %v2351_v56 = vrot.slane %v5777_v6, 5  ;;  %v5880_v37 = vpop.f32.mrb[7].mxu1 }
 0x207   : > { %v1707_v0 = vsel %vm5481_vm12, %v1626_v62, %v1706_v59  ;;  %v1710_v7 = vsel %vm5448_vm14, %v1627_v63, %v1709_v60  ;;  %4508 = vmatpush3.bf16.msra.mxu0 %v4914_v51  ;;  %v4924_v51 = vld [vmem:[%s6103_s3 + $0xc0] sm:$0xff]   ;;  %v2800_v59 = vrot.slane %v2798_v27, 5  ;;  %v2356_v62 = vsel %vm5662_vm5, %v4182_v35, %v2355_v47  ;;  %v2313_v63 = vld [vmem:[#allocation2 + $0x38] sm:$0xe] }
 0x208   : > { %1708 = vst [vmem:[#allocation2 + $0x40] sm:$0xf] %v1707_v0  ;;  %1711 = vst [vmem:[#allocation2 + $0x44] sm:$0x1] %v1710_v7  ;;  %4509 = vmatprep.subr.bf16.mxu0 %v4916_v44  ;;  %v2352_v12 = vsel %vm5662_vm5, %v4181_v55, %v2351_v56  ;;  %v4184_v57 = vrot.slane %v2313_v63, 9  ;;  %v3019_v47 = vrot.slane %v5861_v18, 5 }
 0x209   : > { %v2801_v17 = vsel %vm5648_vm2, %v2796_v45, %v2800_v59  ;;  %v4187_v5 = vcombine.low %v2352_v12, %v2356_v62  ;;  %v4936_v18 = vld [vmem:[%s6103_s3 + $0xe8] sm:$0xff]   ;;  %v4937_v45 = vld [vmem:[%s6103_s3 + $0x1a0] sm:$0xff]   ;;  %v4940_v55 = vld [vmem:[%s6103_s3 + $0xf8] sm:$0xff]  }
 0x20a   : > { %v3350_v56 = vld [vmem:[#allocation2 + $0x18] sm:$0xf]  ;;  %v3348_v59 = vld [vmem:[#allocation2 + $0x10] sm:$0xf]  ;;  %v4946_v12 = vld [vmem:[%s6103_s3 + $0x1c0] sm:$0xff]  }
 0x20b   : > { %4510 = vmatpush3.bf16.msra.mxu0 %v4916_v44  ;;  %v2344_v44 = vsel %vm5662_vm5, %v4179_v58, %v2343_v43  ;;  %v4932_v58 = vld [vmem:[%s6103_s3 + $0x190] sm:$0xff]   ;;  %v4942_v62 = vld [vmem:[#allocation2 + $0x18] ss:$8 sps:$4 sm:$0xff]  }
 0x20c   : > { %4511 = vmatprep.subr.bf16.mxu0 %v4918_v14  ;;  %v4186_v0 = vcombine.low %v2344_v44, %v2348_v54  ;;  %v4934_v43 = vld [vmem:[#allocation2 + $0x10] ss:$8 sps:$4 sm:$0xff]   ;;  %v3365_v44 = vshrl.u32 %v3348_v59, 16 }
 0x20d   : > { %v4941_v54 = vld [vmem:[%s6103_s3 + $0x1b0] sm:$0xff]   ;;  %v4944_v63 = vld [vmem:[%s6103_s3 + $0x1b8] sm:$0xff]  }
 0x20f   : > { %v2702_v19 = vld [vmem:[#allocation2 + $0x40] sm:$0xf]  ;;  %v5863_v20 = vld [vmem:[#allocation2 + $0x44] sm:$0x1]  ;;  %4512 = vmatpush3.bf16.msra.mxu0 %v4918_v14  ;;  %v2312_v14 = vld [vmem:[#allocation2 + $0x30] sm:$0xe] }
 0x210   : > { %v2803_v21 = vshrl.u32 %v2702_v19, 16  ;;  %v2806_v23 = vshll.u32 %v2702_v19, 16  ;;  %4513 = vmatprep.subr.bf16.mxu0 %v4920_v42  ;;  %v2812_v38 = vshll.u32 %v5863_v20, 16  ;;  %v4226_v19 = vrot.slane %v2974_v15, 9  ;;  %v2976_v28 = vld [vmem:[#allocation2 + $0x40] sm:$0xe] }
 0x211   : > { %v4228_v27 = vrot.slane %v2976_v28, 9  ;;  %v5964_v15 = vld [vmem:[#allocation2 + $0x1c] sm:$0x1] }
 0x212   : > { %v2805_v24 = vrot.slane %v2803_v21, 4  ;;  %v2808_v32 = vrot.slane %v2806_v23, 5  ;;  %v2814_v34 = vrot.slane %v2812_v38, 5  ;;  %v4225_v23 = vrot.slane %v2973_v52, 9  ;;  %v4947_v52 = vld [vmem:[#allocation2 + $0x38] ss:$8 sps:$4 sm:$0xff]  }
 0x213   : > { %4514 = vmatpush3.bf16.msra.mxu0 %v4920_v42  ;;  %v2363_v42 = vrot.slane %v5793_v50, 5  ;;  %v4928_v50 = vld [vmem:[%s6103_s3 + $0xd0] sm:$0xff]   ;;  %v3016_v9 = vsel %vm5662_vm5, %v4226_v19, %v3015_v39  ;;  %v3388_v19 = vshll.u32 %v5964_v15, 16 }
 0x214   : > { %v2809_v4 = vor.u32 %v2808_v32, %v2805_v24  ;;  %4515 = vmatprep.subr.bf16.mxu0 %v4922_v13  ;;  %v3012_v22 = vsel %vm5662_vm5, %v4225_v23, %v3011_v26  ;;  %v3023_v24 = vrot.slane %v5863_v20, 5  ;;  %v4929_v32 = vld [vmem:[#allocation2 + $0x8] ss:$8 sps:$4 sm:$0xff]   ;;  %v4933_v20 = vld [vmem:[%s6103_s3 + $0xe0] sm:$0xff]  }
 0x215   : > { %v2364_v21 = vsel %vm5662_vm5, %v4184_v57, %v2363_v42  ;;  %v4231_v38 = vcombine.low %v3012_v22, %v3016_v9  ;;  %v5966_v57 = vld [vmem:[#allocation2 + $0x14] sm:$0x1]  ;;  %v4945_v42 = vld [vmem:[#allocation2 + $0x20] ss:$8 sps:$4 sm:$0xff]   ;;  %v4948_v39 = vld [vmem:[#allocation2 + $0x30] ss:$8 sps:$4 sm:$0xff]  }
 0x216   : > { %v2810_v60 = vrot.slane %v2809_v4, 4  ;;  %v3024_v33 = vsel %vm5662_vm5, %v4228_v27, %v3023_v24  ;;  %v4938_v4 = vld [vmem:[%s6103_s3 + $0xf0] sm:$0xff]   ;;  %v3390_v28 = vrot.slane %v3388_v19, 5  ;;  %v4952_v22 = vld [vmem:[%s6103_s3 + $0x1d8] sm:$0xff]   ;;  %v4953_v24 = vld [vmem:[%s6103_s3 + $0x1e0] sm:$0xff]  }
 0x217   : > { %4516 = vmatpush3.bf16.msra.mxu0 %v4922_v13  ;;  %v4183_v13 = vrot.slane %v2312_v14, 9  ;;  %v4951_v23 = vld [vmem:[%s6103_s3 + $0x1d0] sm:$0xff]   ;;  %v3358_v27 = vld [vmem:[#allocation2 + $0x38] sm:$0xf] }
 0x218   : > { %v2815_v6 = vsel %vm5648_vm2, %v2810_v60, %v2814_v34  ;;  %4525 = vmatprep.subr.bf16.mxu0 %v4924_v51  ;;  %v3379_v60 = vshrl.u32 %v3350_v56, 16  ;;  %v3382_v34 = vshll.u32 %v3350_v56, 16  ;;  %v3360_v56 = vld [vmem:[#allocation2 + $0x40] sm:$0xf] }
 0x219   : > { %v4212_v7 = vcombine.low %v2801_v17, %v2815_v6  ;;  %v2360_v36 = vsel %vm5662_vm5, %v4183_v13, %v2359_v10  ;;  %v3368_v17 = vshll.u32 %v3348_v59, 16  ;;  %v4943_v6 = vld [vmem:[#allocation2 + $0x28] ss:$8 sps:$4 sm:$0xff]  }
 0x21a   : > { %4518 = vmatmul.mubr.bf16.vlgmr.msra.gmra.mrb[20].mxu0 %v4186_v0  ;;  %v4188_v1 = vcombine.low %v2360_v36, %v2364_v21  ;;  %v3381_v0 = vrot.slane %v3379_v60, 4  ;;  %v4949_v13 = vld [vmem:[%s6103_s3 + $0x1c8] sm:$0xff]  }
 0x21b   : > { %4570 = vmatmul.mubr.bf16.gmra.mrb[12].mxu1 %v4212_v7  ;;  %4521 = vmatprep.mubr.bf16.mxu0 %v4187_v5  ;;  %v3384_v7 = vrot.slane %v3382_v34, 5  ;;  %v3370_v14 = vrot.slane %v3368_v17, 5  ;;  %v4955_v34 = vld [vmem:[%s6103_s3 + $0x1f0] sm:$0xff]  }
 0x21c   : > { %4526 = vmatpush3.bf16.msra.mxu0 %v4924_v51  ;;  %4589 = vmatprep.mubr.bf16.mxu1 %v4229_v11  ;;  %v2975_v11 = vld [vmem:[#allocation2 + $0x38] sm:$0xe]  ;;  %v4939_v51 = vld [vmem:[%s6103_s3 + $0x1a8] sm:$0xff]  }
 0x21d   : > { %4527 = vmatprep.subr.bf16.mxu0 %v4926_v3  ;;  %v4227_v35 = vrot.slane %v2975_v11, 9  ;;  %v3385_v5 = vor.u32 %v3384_v7, %v3381_v0  ;;  %v5994_v0 = vld [vmem:[#allocation2 + $0x3c] sm:$0x1]  ;;  %v3449_v7 = vshrl.u32 %v3360_v56, 16 }
 0x21e   : > { %v3444_v19 = vshll.u32 %v5994_v0, 16 }
 0x21f   : > { %v3020_v31 = vsel %vm5662_vm5, %v4227_v35, %v3019_v47  ;;  %v3386_v21 = vrot.slane %v3385_v5, 4  ;;  %v3356_v47 = vld [vmem:[#allocation2 + $0x30] sm:$0xf] }
 0x220   : > { %4528 = vmatpush3.bf16.msra.mxu0 %v4926_v3  ;;  %v3367_v3 = vrot.slane %v3365_v44, 4 }
 0x221   : > { %4529 = vmatprep.subr.bf16.mxu0 %v4928_v50  ;;  %v3391_v9 = vsel %vm5648_vm2, %v3386_v21, %v3390_v28 }
 0x222   : > { %4522 = vmatmul.mubr.bf16.gmra.mrb[24].mxu0 %v4188_v1  ;;  %v3371_v10 = vor.u32 %v3370_v14, %v3367_v3  ;;  %v4950_v1 = vld [vmem:[#allocation2 + $0x40] ss:$8 sps:$4 sm:$0xff]   ;;  %v5996_v3 = vld [vmem:[#allocation2 + $0x24] sm:$0x1] }
 0x223   : > { %4590 = vmatmul.mubr.bf16.vlgmr.msra.gmra.mrb[8].mxu1 %v4230_v40  ;;  %4541 = vmatprep.mubr.bf16.mxu0 %v4929_v32  ;;  %v4232_v40 = vcombine.low %v3020_v31, %v3024_v33  ;;  %v3352_v32 = vld [vmem:[#allocation2 + $0x20] sm:$0xf]  ;;  %v3402_v21 = vshll.u32 %v5996_v3, 16 }
 0x224   : > { %4598 = vmatpush3.bf16.msra.mxu1 %v5791_v46  ;;  %4530 = vmatpush3.bf16.msra.mxu0 %v4928_v50  ;;  %v4935_v46 = vld [vmem:[%s6103_s3 + $0x198] sm:$0xff]   ;;  %v3374_v50 = vshll.u32 %v5966_v57, 16  ;;  %v3372_v26 = vrot.slane %v3371_v10, 4  ;;  %v3393_v33 = vshrl.u32 %v3352_v32, 16  ;;  %v3396_v31 = vshll.u32 %v3352_v32, 16 }
 0x225   : > { %4593 = vmatprep.mubr.bf16.mxu1 %v4231_v38  ;;  %4599 = vmatprep.subr.bf16.mxu1 %v4930_v53 }
 0x226   : > { %4531 = vmatprep.subr.bf16.mxu0 %v4931_v48  ;;  %v3376_v36 = vrot.slane %v3374_v50, 5  ;;  %v3398_v59 = vrot.slane %v3396_v31, 5 }
 0x228   : > { %4600 = vmatpush3.bf16.msra.mxu1 %v4930_v53  ;;  %4532 = vmatpush3.bf16.msra.mxu0 %v4931_v48  ;;  %v3377_v11 = vsel %vm5648_vm2, %v3372_v26, %v3376_v36  ;;  %v3354_v48 = vld [vmem:[#allocation2 + $0x28] sm:$0xf]  ;;  %v3451_v26 = vrot.slane %v3449_v7, 4 }
 0x229   : > { %4601 = vmatprep.subr.bf16.mxu1 %v4932_v58  ;;  %4533 = vmatprep.subr.bf16.mxu0 %v4933_v20  ;;  %v4253_v53 = vcombine.low %v3377_v11, %v3391_v9  ;;  %v3407_v38 = vshrl.u32 %v3354_v48, 16  ;;  %v3410_v35 = vshll.u32 %v3354_v48, 16 }
 0x22b   : > { %4594 = vmatmul.mubr.bf16.gmra.mrb[12].mxu1 %v4232_v40  ;;  %v4954_v40 = vld [vmem:[%s6103_s3 + $0x1e8] sm:$0xff]  }
 0x22c   : > { %4602 = vmatpush3.bf16.msra.mxu1 %v4932_v58  ;;  %4534 = vmatpush3.bf16.msra.mxu0 %v4933_v20  ;;  %v3435_v58 = vshrl.u32 %v3358_v27, 16  ;;  %v3438_v20 = vshll.u32 %v3358_v27, 16  ;;  %v3446_v27 = vrot.slane %v3444_v19, 5  ;;  %v3634_v19 = vld [vmem:[#allocation2 + $0x38] sm:$0xe] }
 0x22d   : > { %4613 = vmatprep.mubr.bf16.mxu1 %v4934_v43  ;;  %4603 = vmatprep.subr.bf16.mxu1 %v4935_v46  ;;  %v3362_v43 = vld [vmem:[#allocation2 + $0x48] sm:$0xf] }
 0x22e   : > { %4535 = vmatprep.subr.bf16.mxu0 %v4936_v18  ;;  %v3463_v60 = vshrl.u32 %v3362_v43, 16  ;;  %v3466_v17 = vshll.u32 %v3362_v43, 16 }
 0x230   : > { %4604 = vmatpush3.bf16.msra.mxu1 %v4935_v46  ;;  %4536 = vmatpush3.bf16.msra.mxu0 %v4936_v18  ;;  %v3421_v46 = vshrl.u32 %v3356_v47, 16  ;;  %v3424_v18 = vshll.u32 %v3356_v47, 16  ;;  %v3468_v50 = vrot.slane %v3466_v17, 5  ;;  %v3655_v17 = vrot.slane %v5966_v57, 5 }
 0x231   : > { %4605 = vmatprep.subr.bf16.mxu1 %v4937_v45  ;;  %4537 = vmatprep.subr.bf16.mxu0 %v4938_v4 }
 0x232   : > { %v3426_v44 = vrot.slane %v3424_v18, 5 }
 0x234   : > { %4606 = vmatpush3.bf16.msra.mxu1 %v4937_v45  ;;  %4538 = vmatpush3.bf16.msra.mxu0 %v4938_v4  ;;  %v3409_v45 = vrot.slane %v3407_v38, 4  ;;  %v3412_v4 = vrot.slane %v3410_v35, 5  ;;  %v3404_v38 = vrot.slane %v3402_v21, 5 }
 0x235   : > { %4607 = vmatprep.subr.bf16.mxu1 %v4939_v51  ;;  %4539 = vmatprep.subr.bf16.mxu0 %v4940_v55 }
 0x238   : > { %4608 = vmatpush3.bf16.msra.mxu1 %v4939_v51  ;;  %4540 = vmatpush3.bf16.msra.mxu0 %v4940_v55  ;;  %v3437_v51 = vrot.slane %v3435_v58, 4  ;;  %v3440_v55 = vrot.slane %v3438_v20, 5 }
 0x239   : > { %4609 = vmatprep.subr.bf16.mxu1 %v4941_v54 }
 0x23a   : > { %v3441_v14 = vor.u32 %v3440_v55, %v3437_v51 }
 0x23b   : > { %4542 = vmatmul.mubr.bf16.vlgmr.msra.gmra.mrb[20].mxu0 %v4942_v62  ;;  %v5992_v62 = vld [vmem:[#allocation2 + $0x2c] sm:$0x1] }
 0x23c   : > { %4610 = vmatpush3.bf16.msra.mxu1 %v4941_v54  ;;  %4545 = vmatprep.mubr.bf16.mxu0 %v4943_v6  ;;  %v3395_v54 = vrot.slane %v3393_v33, 4  ;;  %v3413_v6 = vor.u32 %v3412_v4, %v3409_v45  ;;  %v3442_v9 = vrot.slane %v3441_v14, 4  ;;  %v4958_v45 = vld [vmem:[%s6103_s3 + $0x208] sm:$0xff]  }
 0x23d   : > { %4611 = vmatprep.subr.bf16.mxu1 %v4944_v63 }
 0x23e   : > { %v3399_v5 = vor.u32 %v3398_v59, %v3395_v54  ;;  %v3447_v33 = vsel %vm5648_vm2, %v3442_v9, %v3446_v27  ;;  %v3629_v54 = vld [vmem:[#allocation2 + $0x10] sm:$0xe] }
 0x240   : > { %4612 = vmatpush3.bf16.msra.mxu1 %v4944_v63  ;;  %v3423_v63 = vrot.slane %v3421_v46, 4  ;;  %v3630_v46 = vld [vmem:[#allocation2 + $0x18] sm:$0xe] }
 0x241   : > { %4621 = vmatprep.subr.bf16.mxu1 %v4946_v12  ;;  %v4266_v59 = vrot.slane %v3630_v46, 9  ;;  %v4143_v46 = vld [vmem:[%s6106_s6] ss:$0 sm:$0xff] }
 0x242   : > { %v3427_v10 = vor.u32 %v3426_v44, %v3423_v63  ;;  %v4959_v63 = vld [vmem:[%s6103_s3 + $0x210] sm:$0xff]   ;;  %v4265_v44 = vrot.slane %v3629_v54, 9 }
 0x243   : > { %4614 = vmatmul.mubr.bf16.vlgmr.msra.gmra.mrb[8].mxu1 %v4945_v42  ;;  %4546 = vmatmul.mubr.bf16.gmra.mrb[24].mxu0 %v4947_v52  ;;  %v3416_v42 = vshll.u32 %v5992_v62, 16  ;;  %v5999_v52 = vld [vmem:[#allocation2 + $0x34] sm:$0x1] }
 0x244   : > { %4617 = vmatprep.mubr.bf16.mxu1 %v4948_v39  ;;  %4622 = vmatpush3.bf16.msra.mxu1 %v4946_v12  ;;  %v3452_v12 = vshll.u32 %v3360_v56, 16  ;;  %v3465_v39 = vrot.slane %v3463_v60, 4  ;;  %v3430_v36 = vshll.u32 %v5999_v52, 16  ;;  %v3428_v48 = vrot.slane %v3427_v10, 4  ;;  %v3632_v10 = vld [vmem:[#allocation2 + $0x28] sm:$0xe] }
 0x245   : > { %4623 = vmatprep.subr.bf16.mxu1 %v4949_v13  ;;  %v3418_v11 = vrot.slane %v3416_v42, 5  ;;  %v3659_v60 = vrot.slane %v5964_v15, 5  ;;  %v3656_v14 = vsel %vm5662_vm5, %v4265_v44, %v3655_v17  ;;  %v4962_v42 = vld [vmem:[%s6103_s3 + $0x228] sm:$0xff]   ;;  %v4268_v21 = vrot.slane %v3632_v10, 9 }
 0x246   : > { %v3454_v28 = vrot.slane %v3452_v12, 5  ;;  %v3469_v58 = vor.u32 %v3468_v50, %v3465_v39  ;;  %v3432_v20 = vrot.slane %v3430_v36, 5  ;;  %v4964_v39 = vld [vmem:[%s6103_s3 + $0x238] sm:$0xff]   ;;  %v3631_v50 = vld [vmem:[#allocation2 + $0x20] sm:$0xe]  ;;  %v3675_v36 = vrot.slane %v5994_v0, 5 }
 0x247   : > { %v3660_v15 = vsel %vm5662_vm5, %v4266_v59, %v3659_v60  ;;  %v4267_v9 = vrot.slane %v3631_v50, 9  ;;  %v1824_v44 = vadd.f32 %v4143_v46, %v5870_v30 }
 0x248   : > { %4624 = vmatpush3.bf16.msra.mxu1 %v4949_v13  ;;  %v4956_v13 = vld [vmem:[%s6103_s3 + $0x1f8] sm:$0xff]   ;;  %v3455_v47 = vor.u32 %v3454_v28, %v3451_v26  ;;  %v3433_v43 = vsel %vm5648_vm2, %v3428_v48, %v3432_v20  ;;  %v3470_v55 = vrot.slane %v3469_v58, 4  ;;  %v4273_v57 = vcombine.low %v3656_v14, %v3660_v15  ;;  %v3633_v26 = vld [vmem:[#allocation2 + $0x30] sm:$0xe] }
 0x249   : > { %4625 = vmatprep.subr.bf16.mxu1 %v4951_v23  ;;  %v4255_v4 = vcombine.low %v3433_v43, %v3447_v33  ;;  %v4270_v28 = vrot.slane %v3634_v19, 9  ;;  %v1819_v43 = vadd.f32 %v5854_v61, %v4143_v46  ;;  %v1835_v61 = vadd.f32 %v5874_v49, %v4143_v46 }
 0x24a   : > { %v3456_v51 = vrot.slane %v3455_v47, 4 }
 0x24b   : > { %4618 = vmatmul.mubr.bf16.gmra.mrb[12].mxu1 %v4950_v1  ;;  %v3400_v1 = vrot.slane %v3399_v5, 4  ;;  %v4960_v5 = vld [vmem:[%s6103_s3 + $0x218] sm:$0xff]   ;;  %v3676_v27 = vsel %vm5662_vm5, %v4270_v28, %v3675_v36 }
 0x24c   : > { %4626 = vmatpush3.bf16.msra.mxu1 %v4951_v23  ;;  %4637 = vmatprep.mubr.bf16.mxu1 %v4253_v53  ;;  %v3414_v23 = vrot.slane %v3413_v6, 4  ;;  %v4957_v53 = vld [vmem:[%s6103_s3 + $0x200] sm:$0xff]  }
 0x24d   : > { %4627 = vmatprep.subr.bf16.mxu1 %v4952_v22  ;;  %v3405_v31 = vsel %vm5648_vm2, %v3400_v1, %v3404_v38  ;;  %v3663_v1 = vrot.slane %v5996_v3, 5 }
 0x24e   : > { %v3419_v35 = vsel %vm5648_vm2, %v3414_v23, %v3418_v11  ;;  %v3667_v23 = vrot.slane %v5992_v62, 5  ;;  %v4269_v11 = vrot.slane %v3633_v26, 9  ;;  %v3636_v62 = vld [vmem:[#allocation2 + $0x48] sm:$0xe] }
 0x24f   : > { %v4254_v18 = vcombine.low %v3405_v31, %v3419_v35  ;;  %v3664_v0 = vsel %vm5662_vm5, %v4267_v9, %v3663_v1  ;;  %v4272_v20 = vrot.slane %v3636_v62, 9 }
 0x250   : > { %4628 = vmatpush3.bf16.msra.mxu1 %v4952_v22  ;;  %v6007_v22 = vld [vmem:[#allocation2 + $0x4c] sm:$0x1]  ;;  %v3668_v48 = vsel %vm5662_vm5, %v4268_v21, %v3667_v23 }
 0x251   : > { %4629 = vmatprep.subr.bf16.mxu1 %v4953_v24  ;;  %v3472_v32 = vshll.u32 %v6007_v22, 16  ;;  %v4274_v38 = vcombine.low %v3664_v0, %v3668_v48  ;;  %v3683_v35 = vrot.slane %v6007_v22, 5  ;;  %v1816_v22 = vadd.f32 %v5847_v41, %v4143_v46 }
 0x252   : > { %v1832_v41 = vadd.f32 %v5866_v29, %v4143_v46 }
 0x253   : > { %v3474_v56 = vrot.slane %v3472_v32, 5  ;;  %v3635_v32 = vld [vmem:[#allocation2 + $0x40] sm:$0xe]  ;;  %v3684_v31 = vsel %vm5662_vm5, %v4272_v20, %v3683_v35 }
 0x254   : > { %4630 = vmatpush3.bf16.msra.mxu1 %v4953_v24  ;;  %v6012_v24 = vld [vmem:[#allocation2 + $0x44] sm:$0x1] }
 0x255   : > { %4631 = vmatprep.subr.bf16.mxu1 %v4954_v40  ;;  %v3475_v7 = vsel %vm5648_vm2, %v3470_v55, %v3474_v56  ;;  %v3679_v58 = vrot.slane %v6012_v24, 5 }
 0x258   : > { %4632 = vmatpush3.bf16.msra.mxu1 %v4954_v40  ;;  %v3458_v40 = vshll.u32 %v6012_v24, 16  ;;  %v4152_v24 = vld [vmem:[%s6104_s4] ss:$0 sm:$0xff] }
 0x259   : > { %4633 = vmatprep.subr.bf16.mxu1 %v4955_v34  ;;  %v1847_v2 = vadd.f32 %v4152_v24, %v1816_v22  ;;  %v1848_v54 = vadd.f32 %v4152_v24, %v1819_v43  ;;  %v1849_v15 = vadd.f32 %v4152_v24, %v1824_v44 }
 0x25c   : > { %4634 = vmatpush3.bf16.msra.mxu1 %v4955_v34  ;;  %v3460_v34 = vrot.slane %v3458_v40, 5 }
 0x25d   : > { %4635 = vmatprep.subr.bf16.mxu1 %v4956_v13 }
 0x25e   : > { %v3461_v6 = vsel %vm5648_vm2, %v3456_v51, %v3460_v34 }
 0x25f   : > { %v4256_v12 = vcombine.low %v3461_v6, %v3475_v7  ;;  %v1851_v6 = vadd.f32 %v4152_v24, %v1832_v41 }
 0x260   : > { %4636 = vmatpush3.bf16.msra.mxu1 %v4956_v13  ;;  %v4963_v13 = vld [vmem:[%s6103_s3 + $0x230] sm:$0xff]  }
 0x261   : > { %4645 = vmatprep.subr.bf16.mxu1 %v4957_v53 }
 0x263   : > { %4638 = vmatmul.mubr.bf16.vlgmr.msra.gmra.mrb[8].mxu1 %v4254_v18  ;;  %v1808_v18 = vadd.f32 %v4143_v46, %v5849_v8 }
 0x264   : > { %4641 = vmatprep.mubr.bf16.mxu1 %v4255_v4  ;;  %4646 = vmatpush3.bf16.msra.mxu1 %v4957_v53  ;;  %v3671_v53 = vrot.slane %v5999_v52, 5  ;;  %v4271_v52 = vrot.slane %v3635_v32, 9 }
 0x265   : > { %4647 = vmatprep.subr.bf16.mxu1 %v4958_v45  ;;  %v1845_v51 = vadd.f32 %v4152_v24, %v1808_v18 }
 0x266   : > { %v3672_v3 = vsel %vm5662_vm5, %v4269_v11, %v3671_v53  ;;  %v3680_v33 = vsel %vm5662_vm5, %v4271_v52, %v3679_v58 }
 0x267   : > { %v4275_v47 = vcombine.low %v3672_v3, %v3676_v27  ;;  %v4276_v40 = vcombine.low %v3680_v33, %v3684_v31 }
 0x268   : > { %4648 = vmatpush3.bf16.msra.mxu1 %v4958_v45  ;;  %v1811_v45 = vadd.f32 %v4143_v46, %v5856_v16  ;;  %v1827_v16 = vadd.f32 %v4143_v46, %v5880_v37 }
 0x269   : > { %4649 = vmatprep.subr.bf16.mxu1 %v4959_v63 }
 0x26a   : > { %v1846_v34 = vadd.f32 %v4152_v24, %v1811_v45 }
 0x26b   : > { %4642 = vmatmul.mubr.bf16.gmra.mrb[12].mxu1 %v4256_v12 }
 0x26c   : > { %4650 = vmatpush3.bf16.msra.mxu1 %v4959_v63  ;;  %4661 = vmatprep.mubr.bf16.mxu1 %v4273_v57 }
 0x26d   : > { %4651 = vmatprep.subr.bf16.mxu1 %v4960_v5 }
 0x270   : > { %4652 = vmatpush3.bf16.msra.mxu1 %v4960_v5  ;;  %v1852_v5 = vadd.f32 %v4152_v24, %v1835_v61 }
 0x271   : > { %4653 = vmatprep.subr.bf16.mxu1 %v4961_v25 }
 0x274   : > { %4654 = vmatpush3.bf16.msra.mxu1 %v4961_v25 }
 0x275   : > { %4655 = vmatprep.subr.bf16.mxu1 %v4962_v42 }
 0x278   : > { %4656 = vmatpush3.bf16.msra.mxu1 %v4962_v42  ;;  %v1850_v42 = vadd.f32 %v4152_v24, %v1827_v16 }
 0x279   : > { %4657 = vmatprep.subr.bf16.mxu1 %v4963_v13 }
 0x27c   : > { %4658 = vmatpush3.bf16.msra.mxu1 %v4963_v13 }
 0x27d   : > { %4659 = vmatprep.subr.bf16.mxu1 %v4964_v39 }
 0x280   : > { %4660 = vmatpush3.bf16.msra.mxu1 %v4964_v39 }
 0x283   : > { %4662 = vmatmul.mubr.bf16.vlgmr.msra.gmra.mrb[8].mxu1 %v4274_v38 }
 0x284   : > { %4665 = vmatprep.mubr.bf16.mxu1 %v4275_v47 }
 0x28b   : > { %4666 = vmatmul.mubr.bf16.gmra.mrb[12].mxu1 %v4276_v40 }
 0x30e   : > { %v4543_v4 = vpop.f32.mrb[20].mxu0 }
 0x30f   : > { %v4671_v55 = vadd.f32 %v4543_v4, %v1847_v2  ;;  %v2649_v56 = vpop.f32.mrb[21].mxu0 }
 0x310   : > { %v4675_v59 = vadd.f32 %v2649_v56, %v1845_v51  ;;  %v4544_v60 = vpop.f32.mrb[22].mxu0 }
 0x311   : > { %v4679_v8 = vadd.f32 %v4544_v60, %v1848_v54  ;;  %v2652_v63 = vpop.f32.mrb[23].mxu0 }
 0x312   : > { %v4683_v17 = vadd.f32 %v2652_v63, %v1846_v34 }
 0x316   : > { %v4547_v7 = vpop.f32.mrb[24].mxu0 }
 0x317   : > { %v4687_v12 = vadd.f32 %v4547_v7, %v1851_v6  ;;  %v2665_v14 = vpop.f32.mrb[25].mxu0 }
 0x318   : > { %v4691_v57 = vadd.f32 %v2665_v14, %v1849_v15  ;;  %v4548_v25 = vpop.f32.mrb[26].mxu0 }
 0x319   : > { %v4695_v29 = vadd.f32 %v4548_v25, %v1852_v5  ;;  %v2668_v13 = vpop.f32.mrb[27].mxu0 }
 0x31a   : > { %v4699_v10 = vadd.f32 %v2668_v13, %v1850_v42 }
 0x356   : > { %v4663_v30 = vpop.f32.mrb[8].mxu1 }
 0x357   : > { %v4672_v49 = vadd.f32 %v4671_v55, %v4663_v30  ;;  %v3799_v37 = vpop.f32.mrb[9].mxu1 }
 0x358   : > { %v4676_v19 = vadd.f32 %v4675_v59, %v3799_v37  ;;  %v4664_v39 = vpop.f32.mrb[10].mxu1 }
 0x359   : > { %3840 = vst [vmem:[%s300_s8 + $0x10] sm:$0xff] %v4672_v49  ;;  %v4680_v50 = vadd.f32 %v4679_v8, %v4664_v39  ;;  %v3802_v21 = vpop.f32.mrb[11].mxu1 }
 0x35a   : > { %3838 = vst [vmem:[%s300_s8] sm:$0xff] %v4676_v19  ;;  %v4684_v23 = vadd.f32 %v4683_v17, %v3802_v21 }
 0x35b   : > { %3841 = vst [vmem:[%s300_s8 + $0x18] sm:$0xff] %v4680_v50 }
 0x35c   : > { %3839 = vst [vmem:[%s300_s8 + $0x8] sm:$0xff] %v4684_v23 }
 0x35e   : > { %v4667_v26 = vpop.f32.mrb[12].mxu1 }
 0x35f   : > { %v4688_v28 = vadd.f32 %v4687_v12, %v4667_v26  ;;  %v3815_v36 = vpop.f32.mrb[13].mxu1 }
 0x360   : > { %v4692_v9 = vadd.f32 %v4691_v57, %v3815_v36  ;;  %v4668_v1 = vpop.f32.mrb[14].mxu1 }
 0x361   : > { %3844 = vst [vmem:[%s300_s8 + $0x30] sm:$0xff] %v4688_v28  ;;  %v4696_v11 = vadd.f32 %v4695_v29, %v4668_v1  ;;  %v3818_v53 = vpop.f32.mrb[15].mxu1 }
 0x362   : > { %3842 = vst [vmem:[%s300_s8 + $0x20] sm:$0xff] %v4692_v9  ;;  %v4700_v48 = vadd.f32 %v4699_v10, %v3818_v53 }
 0x363   : > { %3845 = vst [vmem:[%s300_s8 + $0x38] sm:$0xff] %v4696_v11 }
 0x364   : > { %3843 = vst [vmem:[%s300_s8 + $0x28] sm:$0xff] %v4700_v48 }
 0x365 PF: > { %s17_s26 = sadd.s32 1, %s4989_s26   ;;  %s6118_s24 = smov %s4985_s25 }
 0x366   : > { %p14_p5 = scmp.ge.s32.totalorder %s17_s26, 4   ;;  %s6119_s25 = smov %s6121_s27 }
 0x368   :  { %16 = sbr.rel (!%p14_p5) target bundleno = 2 (0x2), region = 87 }

</bundles_post_ra>
